<compile_context>
chip_gen: v5e
topology: v5e:2x2
jax: 0.10.0
libtpu: 0.0.40
codegen_flags: <defaults>
</compile_context>

<pallas_src>
import numpy as np
import jax
import jax.numpy as jnp
from jax.experimental import pallas as pl
from jax.experimental.pallas import tpu as pltpu

# ---- compile-time configuration ----
N, H, W  = 2, 16, 16
HW       = H * W                  # 256 pixels per image
L        = N * HW                 # 512 lanes: batch folded onto the lane axis
CIN      = 8                      # block_args.input_filters
EXPAND   = 6                      # block_args.expand_ratio
CEXP     = CIN * EXPAND           # 48 expanded channels
K        = 3                      # block_args.kernel_size
STRIDE   = 1                      # block_args.stride (only stride 1 implemented here)
SE_RATIO = 0.25
CSE      = max(1, int(CIN * SE_RATIO))   # 2 squeezed channels
COUT     = CIN                    # block_args.output_filters (== input -> residual path)
BN_EPS   = 1e-3

# slab A column layout (rows = CEXP)
WEXP_C0  = 0                      # (CEXP, CIN)   expand weight (BN0 folded)
WDW_C0   = CIN                    # (CEXP, K*K)   depthwise weight (BN1 folded)
WSER_C0  = CIN + K * K            # (CEXP, CSE)   w_se_reduce^T
B0_COL   = WSER_C0 + CSE          # (CEXP, 1)     bn0 bias
B1_COL   = B0_COL + 1             # (CEXP, 1)     bn1 bias
A_COLS   = B1_COL + 1             # 21

# slab B row layout (cols = CEXP + 1)
B_COLS   = CEXP + 1               # 49
SEE_R0   = COUT                   # rows COUT..COUT+CSE-1: w_se_expand^T ; last col = b_se_reduce
BSEE_ROW = COUT + CSE             # row: b_se_expand (last col unused)
B_ROWS   = BSEE_ROW + 1           # 11


def relu6(x):
    return jnp.clip(x, 0.0, 6.0)


def mbconv_kernel(x_ref, wa_ref, wb_ref, o_ref):
    x = x_ref[...]                                              # (CIN, L) f32, pixels+batch on lanes

    # --- 1) expand 1x1 conv (BN0 scale pre-folded) + bias + relu6 ---
    w_exp = wa_ref[:, WEXP_C0:WEXP_C0 + CIN]                    # (CEXP, CIN)
    b0 = wa_ref[:, B0_COL:B0_COL + 1]                           # (CEXP, 1)
    e = jnp.dot(w_exp, x, preferred_element_type=jnp.float32)   # (CEXP, L)
    e = relu6(e + b0)

    # --- 2) depthwise 3x3 conv, stride 1, SAME padding (BN1 scale pre-folded) ---
    # Masks hoisted & built once at (1, L); div/mod strength-reduced to shift/and.
    lane = jax.lax.broadcasted_iota(jnp.int32, (1, L), 1)
    col = lane & (W - 1)
    row = (lane >> 4) & (H - 1)
    keep_for_left  = col <= (W - 2)      # zero col W-1 in the dx=-1 source
    keep_for_right = col >= 1            # zero col 0   in the dx=+1 source
    row_ok_top = row >= 1                # dy=-1 validity (output row)
    row_ok_bot = row <= (H - 2)          # dy=+1 validity (output row)

    wdw = wa_ref[:, WDW_C0:WDW_C0 + K * K]                      # (CEXP, 9)

    def wt(t):
        return wdw[:, t:t + 1]                                  # (CEXP, 1) tap weight

    # column shifts (pre-zeroed so roll wrap across rows / images contributes nothing)
    cL = pltpu.roll(jnp.where(keep_for_left, e, 0.0), 1, 1)     # value of e[r, c-1]
    cR = pltpu.roll(jnp.where(keep_for_right, e, 0.0), L - 1, 1)  # value of e[r, c+1]

    # per-kernel-row partial sums (before the row shift)
    p_top = cL * wt(0) + e * wt(1) + cR * wt(2)                 # kernel row 0 (dy=-1)
    p_mid = cL * wt(3) + e * wt(4) + cR * wt(5)                 # kernel row 1 (dy= 0)
    p_bot = cL * wt(6) + e * wt(7) + cR * wt(8)                 # kernel row 2 (dy=+1)

    acc = p_mid                                                  # centre row = init (no zeros+add)
    acc = acc + jnp.where(row_ok_top, pltpu.roll(p_top, W, 1), 0.0)
    acc = acc + jnp.where(row_ok_bot, pltpu.roll(p_bot, L - W, 1), 0.0)

    b1 = wa_ref[:, B1_COL:B1_COL + 1]                            # (CEXP, 1)
    d = relu6(acc + b1)                                          # (CEXP, L)

    # --- 3+4) per-image squeeze-and-excite folded into the projection weight, + skip ---
    w_ser = wa_ref[:, WSER_C0:WSER_C0 + CSE]                     # (CEXP, CSE)
    w_proj = wb_ref[0:COUT, 0:CEXP]                              # (COUT, CEXP) (BN2 folded)
    b2 = wb_ref[0:COUT, CEXP:CEXP + 1]                           # (COUT, 1)
    b_see_row = wb_ref[BSEE_ROW:BSEE_ROW + 1, 0:CEXP]            # (1, CEXP)
    w_see_rows = [wb_ref[SEE_R0 + j:SEE_R0 + j + 1, 0:CEXP] for j in range(CSE)]   # (1, CEXP)
    b_ser_vals = [wb_ref[SEE_R0 + j:SEE_R0 + j + 1, CEXP:CEXP + 1] for j in range(CSE)]  # (1, 1)

    inv_hw = 1.0 / HW
    for n in range(N):
        lo = n * HW
        d_n = d[:, lo:lo + HW]                                   # (CEXP, HW), lane-aligned slice
        pooled = jnp.sum(d_n, axis=1, keepdims=True) * inv_hw    # (CEXP, 1)
        s1_pre = jnp.sum(w_ser * pooled, axis=0, keepdims=True)  # (1, CSE)
        s2 = b_see_row                                            # (1, CEXP)
        for j in range(CSE):
            s1_j = relu6(s1_pre[:, j:j + 1] + b_ser_vals[j])      # (1, 1)
            s2 = s2 + s1_j * w_see_rows[j]                        # (1, CEXP)
        gate = pl.reciprocal(1.0 + jnp.exp(-s2), approx=True)     # sigmoid, (1, CEXP)

        # project 1x1 conv with the SE gate folded into the (COUT, CEXP) weight,
        # BN2 bias add, then identity skip (id_skip, stride 1, CIN == COUT, drop rate 0).
        # TODO(synk): drop_connect (Dropout-based) is identity at rate 0 / inference; no RNG kernel emitted.
        p_n = jnp.dot(w_proj * gate, d_n, preferred_element_type=jnp.float32) + b2
        o_ref[:, lo:lo + HW] = (p_n + x[:, lo:lo + HW]).astype(o_ref.dtype)


@jax.jit
def mbconv_block(x_nchw, params):
    """Wrapper: NCHW in/out (PyTorch convention)."""
    p = params
    # (N, C, H, W) -> (C, N*H*W): batch+pixels share the 512-wide lane axis.
    x2d = jnp.transpose(x_nchw.astype(jnp.float32), (1, 0, 2, 3)).reshape(CIN, L)

    # Fold BN scales into the conv weights (commutes with 1x1 / depthwise convs),
    # and pack all small operands into two VMEM slabs.
    slab_a = jnp.concatenate([
        p["w_exp"] * p["bn0_scale"][:, None],                               # (CEXP, CIN)
        (p["w_dw"] * p["bn1_scale"][:, None, None]).reshape(CEXP, K * K),   # (CEXP, 9)
        p["w_se_red"].T,                                                    # (CEXP, CSE)
        p["bn0_bias"][:, None],                                             # (CEXP, 1)
        p["bn1_bias"][:, None],                                             # (CEXP, 1)
    ], axis=1).astype(jnp.float32)                                          # (CEXP, A_COLS)

    proj_rows = jnp.concatenate(
        [p["w_proj"] * p["bn2_scale"][:, None], p["bn2_bias"][:, None]], axis=1)      # (COUT, 49)
    see_rows = jnp.concatenate([p["w_se_exp"].T, p["b_se_red"][:, None]], axis=1)     # (CSE, 49)
    bsee_row = jnp.concatenate(
        [p["b_se_exp"][None, :], jnp.zeros((1, 1), jnp.float32)], axis=1)             # (1, 49)
    slab_b = jnp.concatenate([proj_rows, see_rows, bsee_row], axis=0).astype(jnp.float32)  # (B_ROWS, B_COLS)

    out = pl.pallas_call(
        mbconv_kernel,
        out_shape=jax.ShapeDtypeStruct((COUT, L), jnp.float32),
        grid=(1,),
        in_specs=[
            pl.BlockSpec((CIN, L), lambda i: (0, 0)),
            pl.BlockSpec((CEXP, A_COLS), lambda i: (0, 0)),
            pl.BlockSpec((B_ROWS, B_COLS), lambda i: (0, 0)),
        ],
        out_specs=pl.BlockSpec((COUT, L), lambda i: (0, 0)),
        compiler_params=pltpu.CompilerParams(dimension_semantics=("arbitrary",)),
    )(x2d, slab_a, slab_b)

    return jnp.transpose(out.reshape(COUT, N, H, W), (1, 0, 2, 3))


def make_params(key):
    ks = jax.random.split(key, 10)

    def nrm(k, shape, scale=0.1):
        return jax.random.normal(k, shape, jnp.float32) * scale

    p = {}
    # torch _expand_conv weight (CEXP, CIN, 1, 1) stored squeezed as (CEXP, CIN)
    p["w_exp"] = nrm(ks[0], (CEXP, CIN))
    # torch _depthwise_conv weight (CEXP, 1, K, K) stored squeezed as (CEXP, K, K)
    p["w_dw"] = nrm(ks[1], (CEXP, K, K))
    # SE 1x1 convs (with bias), torch layout (out, in)
    p["w_se_red"] = nrm(ks[2], (CSE, CEXP))
    p["b_se_red"] = nrm(ks[3], (CSE,))
    p["w_se_exp"] = nrm(ks[4], (CEXP, CSE))
    p["b_se_exp"] = nrm(ks[5], (CEXP,))
    # torch _project_conv weight (COUT, CEXP, 1, 1) stored squeezed as (COUT, CEXP)
    p["w_proj"] = nrm(ks[6], (COUT, CEXP))

    def bn_fold(kk, c):
        k1, k2, k3, k4 = jax.random.split(kk, 4)
        gamma = 1.0 + 0.1 * jax.random.normal(k1, (c,), jnp.float32)
        beta = 0.1 * jax.random.normal(k2, (c,), jnp.float32)
        mean = 0.1 * jax.random.normal(k3, (c,), jnp.float32)
        var = jax.random.uniform(k4, (c,), jnp.float32, minval=0.5, maxval=1.5)
        scale = gamma / jnp.sqrt(var + BN_EPS)
        bias = beta - mean * scale
        return scale, bias

    p["bn0_scale"], p["bn0_bias"] = bn_fold(ks[7], CEXP)
    p["bn1_scale"], p["bn1_bias"] = bn_fold(ks[8], CEXP)
    p["bn2_scale"], p["bn2_bias"] = bn_fold(ks[9], COUT)
    return p


def reference(x_nchw, p):
    """Pure-JAX reference (same math, XLA convs, unfolded BN) for correctness checking."""
    hi = jax.lax.Precision.HIGHEST
    x = x_nchw.astype(jnp.float32)                                        # NCHW
    # expand 1x1 + BN0 + relu6
    e = jnp.einsum("oc,nchw->nohw", p["w_exp"], x, precision=hi)
    e = relu6(e * p["bn0_scale"][None, :, None, None] + p["bn0_bias"][None, :, None, None])
    # depthwise 3x3 + BN1 + relu6
    dw = p["w_dw"][:, None, :, :]                                         # (CEXP, 1, K, K)
    d = jax.lax.conv_general_dilated(
        e, dw, window_strides=(STRIDE, STRIDE), padding="SAME",
        dimension_numbers=("NCHW", "OIHW", "NCHW"),
        feature_group_count=CEXP, precision=hi)
    d = relu6(d * p["bn1_scale"][None, :, None, None] + p["bn1_bias"][None, :, None, None])
    # SE
    pooled = jnp.mean(d, axis=(2, 3), keepdims=True)
    s = jnp.einsum("jc,nchw->njhw", p["w_se_red"], pooled, precision=hi) \
        + p["b_se_red"][None, :, None, None]
    s = relu6(s)
    s = jnp.einsum("cj,njhw->nchw", p["w_se_exp"], s, precision=hi) \
        + p["b_se_exp"][None, :, None, None]
    d = d * jax.nn.sigmoid(s)
    # project 1x1 + BN2 + skip
    o = jnp.einsum("oc,nchw->nohw", p["w_proj"], d, precision=hi)
    o = o * p["bn2_scale"][None, :, None, None] + p["bn2_bias"][None, :, None, None]
    o = o + x
    return o


if __name__ == "__main__":
    key = jax.random.PRNGKey(0)
    kx, kp = jax.random.split(key)
    x = jax.random.normal(kx, (N, CIN, H, W), jnp.float32)   # NCHW, like PyTorch input
    params = make_params(kp)

    out = mbconv_block(x, params)
    out = jax.block_until_ready(out)

    ref = reference(x, params)
    np.testing.assert_allclose(np.asarray(out), np.asarray(ref), rtol=2e-3, atol=2e-3)
    print("KERNEL_OK")
</pallas_src>

<mosaic_0001>
module attributes {stable_mosaic.version = 11 : i64} {
  func.func @mbconv_kernel(%arg0: i32, %arg1: memref<8x512xf32, #tpu.memory_space<vmem>>, %arg2: memref<48x21xf32, #tpu.memory_space<vmem>>, %arg3: memref<11x49xf32, #tpu.memory_space<vmem>>, %arg4: memref<8x512xf32, #tpu.memory_space<vmem>>) attributes {dimension_semantics = [#tpu.dimension_semantics<arbitrary>], iteration_bounds = array<i64: 1>, scalar_prefetch = 0 : i64, scratch_operands = 0 : i64, tpu.core_type = #tpu.core_type<tc>, window_params = [{pipeline_mode = #tpu.pipeline_mode<synchronous>, transform_indices = @transform_0, window_bounds = array<i64: 8, 512>}, {pipeline_mode = #tpu.pipeline_mode<synchronous>, transform_indices = @transform_1, window_bounds = array<i64: 48, 21>}, {pipeline_mode = #tpu.pipeline_mode<synchronous>, transform_indices = @transform_2, window_bounds = array<i64: 11, 49>}, {pipeline_mode = #tpu.pipeline_mode<synchronous>, transform_indices = @transform_3, window_bounds = array<i64: 8, 512>}]} {
    %c0 = arith.constant 0 : index
    %c0_0 = arith.constant 0 : index
    %0 = vector.load %arg1[%c0, %c0_0] : memref<8x512xf32, #tpu.memory_space<vmem>>, vector<8x512xf32>
    %c0_1 = arith.constant 0 : index
    %c0_2 = arith.constant 0 : index
    %1 = vector.load %arg2[%c0_1, %c0_2] : memref<48x21xf32, #tpu.memory_space<vmem>>, vector<48x8xf32>
    %c0_3 = arith.constant 0 : index
    %c19 = arith.constant 19 : index
    %2 = vector.load %arg2[%c0_3, %c19] : memref<48x21xf32, #tpu.memory_space<vmem>>, vector<48x1xf32>
    %cst = arith.constant dense<0.000000e+00> : vector<48x512xf32>
    %3 = tpu.matmul %1, %0, %cst {dimension_numbers = #tpu.dot_dimension_numbers<[1], [0], [0], [1], [0, 0, 1, 1], [], []>} : vector<48x8xf32>, vector<8x512xf32>, vector<48x512xf32> -> vector<48x512xf32>
    %4 = vector.broadcast %2 : vector<48x1xf32> to vector<48x512xf32>
    %5 = arith.addf %3, %4 : vector<48x512xf32>
    %cst_4 = arith.constant 0.000000e+00 : f32
    %cst_5 = arith.constant 6.000000e+00 : f32
    %6 = vector.broadcast %cst_4 : f32 to vector<48x512xf32>
    %7 = arith.maximumf %6, %5 : vector<48x512xf32>
    %8 = vector.broadcast %cst_5 : f32 to vector<48x512xf32>
    %9 = arith.minimumf %8, %7 : vector<48x512xf32>
    %10 = tpu.iota {dimensions = array<i32: 1>} : vector<1x512xi32>
    %c15_i32 = arith.constant 15 : i32
    %11 = vector.broadcast %c15_i32 : i32 to vector<1x512xi32>
    %12 = arith.andi %10, %11 : vector<1x512xi32>
    %c4_i32 = arith.constant 4 : i32
    %13 = vector.broadcast %c4_i32 : i32 to vector<1x512xi32>
    %14 = arith.shrsi %10, %13 : vector<1x512xi32>
    %c15_i32_6 = arith.constant 15 : i32
    %15 = vector.broadcast %c15_i32_6 : i32 to vector<1x512xi32>
    %16 = arith.andi %14, %15 : vector<1x512xi32>
    %c14_i32 = arith.constant 14 : i32
    %17 = vector.broadcast %c14_i32 : i32 to vector<1x512xi32>
    %18 = arith.cmpi sle, %12, %17 : vector<1x512xi32>
    %c1_i32 = arith.constant 1 : i32
    %19 = vector.broadcast %c1_i32 : i32 to vector<1x512xi32>
    %20 = arith.cmpi sge, %12, %19 : vector<1x512xi32>
    %c1_i32_7 = arith.constant 1 : i32
    %21 = vector.broadcast %c1_i32_7 : i32 to vector<1x512xi32>
    %22 = arith.cmpi sge, %16, %21 : vector<1x512xi32>
    %c14_i32_8 = arith.constant 14 : i32
    %23 = vector.broadcast %c14_i32_8 : i32 to vector<1x512xi32>
    %24 = arith.cmpi sle, %16, %23 : vector<1x512xi32>
    %c0_9 = arith.constant 0 : index
    %c8 = arith.constant 8 : index
    %25 = vector.load %arg2[%c0_9, %c8] : memref<48x21xf32, #tpu.memory_space<vmem>>, vector<48x9xf32>
    %cst_10 = arith.constant 0.000000e+00 : f32
    %26 = vector.shape_cast %18 : vector<1x512xi1> to vector<1x512xi1>
    %27 = vector.broadcast %26 : vector<1x512xi1> to vector<48x512xi1>
    %28 = vector.broadcast %cst_10 : f32 to vector<48x512xf32>
    %29 = arith.select %27, %9, %28 : vector<48x512xi1>, vector<48x512xf32>
    %c1_i32_11 = arith.constant 1 : i32
    %30 = tpu.dynamic_rotate %29 by %c1_i32_11 dim 1 : vector<48x512xf32>, i32 -> vector<48x512xf32>
    %cst_12 = arith.constant 0.000000e+00 : f32
    %31 = vector.shape_cast %20 : vector<1x512xi1> to vector<1x512xi1>
    %32 = vector.broadcast %31 : vector<1x512xi1> to vector<48x512xi1>
    %33 = vector.broadcast %cst_12 : f32 to vector<48x512xf32>
    %34 = arith.select %32, %9, %33 : vector<48x512xi1>, vector<48x512xf32>
    %c511_i32 = arith.constant 511 : i32
    %35 = tpu.dynamic_rotate %34 by %c511_i32 dim 1 : vector<48x512xf32>, i32 -> vector<48x512xf32>
    %36 = vector.extract_strided_slice %25 {offsets = [0, 0], sizes = [48, 1], strides = [1, 1]} : vector<48x9xf32> to vector<48x1xf32>
    %37 = vector.broadcast %36 : vector<48x1xf32> to vector<48x512xf32>
    %38 = arith.mulf %30, %37 : vector<48x512xf32>
    %39 = vector.extract_strided_slice %25 {offsets = [0, 1], sizes = [48, 1], strides = [1, 1]} : vector<48x9xf32> to vector<48x1xf32>
    %40 = vector.broadcast %39 : vector<48x1xf32> to vector<48x512xf32>
    %41 = arith.mulf %9, %40 : vector<48x512xf32>
    %42 = arith.addf %38, %41 : vector<48x512xf32>
    %43 = vector.extract_strided_slice %25 {offsets = [0, 2], sizes = [48, 1], strides = [1, 1]} : vector<48x9xf32> to vector<48x1xf32>
    %44 = vector.broadcast %43 : vector<48x1xf32> to vector<48x512xf32>
    %45 = arith.mulf %35, %44 : vector<48x512xf32>
    %46 = arith.addf %42, %45 : vector<48x512xf32>
    %47 = vector.extract_strided_slice %25 {offsets = [0, 3], sizes = [48, 1], strides = [1, 1]} : vector<48x9xf32> to vector<48x1xf32>
    %48 = vector.broadcast %47 : vector<48x1xf32> to vector<48x512xf32>
    %49 = arith.mulf %30, %48 : vector<48x512xf32>
    %50 = vector.extract_strided_slice %25 {offsets = [0, 4], sizes = [48, 1], strides = [1, 1]} : vector<48x9xf32> to vector<48x1xf32>
    %51 = vector.broadcast %50 : vector<48x1xf32> to vector<48x512xf32>
    %52 = arith.mulf %9, %51 : vector<48x512xf32>
    %53 = arith.addf %49, %52 : vector<48x512xf32>
    %54 = vector.extract_strided_slice %25 {offsets = [0, 5], sizes = [48, 1], strides = [1, 1]} : vector<48x9xf32> to vector<48x1xf32>
    %55 = vector.broadcast %54 : vector<48x1xf32> to vector<48x512xf32>
    %56 = arith.mulf %35, %55 : vector<48x512xf32>
    %57 = arith.addf %53, %56 : vector<48x512xf32>
    %58 = vector.extract_strided_slice %25 {offsets = [0, 6], sizes = [48, 1], strides = [1, 1]} : vector<48x9xf32> to vector<48x1xf32>
    %59 = vector.broadcast %58 : vector<48x1xf32> to vector<48x512xf32>
    %60 = arith.mulf %30, %59 : vector<48x512xf32>
    %61 = vector.extract_strided_slice %25 {offsets = [0, 7], sizes = [48, 1], strides = [1, 1]} : vector<48x9xf32> to vector<48x1xf32>
    %62 = vector.broadcast %61 : vector<48x1xf32> to vector<48x512xf32>
    %63 = arith.mulf %9, %62 : vector<48x512xf32>
    %64 = arith.addf %60, %63 : vector<48x512xf32>
    %65 = vector.extract_strided_slice %25 {offsets = [0, 8], sizes = [48, 1], strides = [1, 1]} : vector<48x9xf32> to vector<48x1xf32>
    %66 = vector.broadcast %65 : vector<48x1xf32> to vector<48x512xf32>
    %67 = arith.mulf %35, %66 : vector<48x512xf32>
    %68 = arith.addf %64, %67 : vector<48x512xf32>
    %c16_i32 = arith.constant 16 : i32
    %69 = tpu.dynamic_rotate %46 by %c16_i32 dim 1 : vector<48x512xf32>, i32 -> vector<48x512xf32>
    %cst_13 = arith.constant 0.000000e+00 : f32
    %70 = vector.shape_cast %22 : vector<1x512xi1> to vector<1x512xi1>
    %71 = vector.broadcast %70 : vector<1x512xi1> to vector<48x512xi1>
    %72 = vector.broadcast %cst_13 : f32 to vector<48x512xf32>
    %73 = arith.select %71, %69, %72 : vector<48x512xi1>, vector<48x512xf32>
    %74 = arith.addf %57, %73 : vector<48x512xf32>
    %c496_i32 = arith.constant 496 : i32
    %75 = tpu.dynamic_rotate %68 by %c496_i32 dim 1 : vector<48x512xf32>, i32 -> vector<48x512xf32>
    %cst_14 = arith.constant 0.000000e+00 : f32
    %76 = vector.shape_cast %24 : vector<1x512xi1> to vector<1x512xi1>
    %77 = vector.broadcast %76 : vector<1x512xi1> to vector<48x512xi1>
    %78 = vector.broadcast %cst_14 : f32 to vector<48x512xf32>
    %79 = arith.select %77, %75, %78 : vector<48x512xi1>, vector<48x512xf32>
    %80 = arith.addf %74, %79 : vector<48x512xf32>
    %c0_15 = arith.constant 0 : index
    %c20 = arith.constant 20 : index
    %81 = vector.load %arg2[%c0_15, %c20] : memref<48x21xf32, #tpu.memory_space<vmem>>, vector<48x1xf32>
    %82 = vector.broadcast %81 : vector<48x1xf32> to vector<48x512xf32>
    %83 = arith.addf %80, %82 : vector<48x512xf32>
    %cst_16 = arith.constant 0.000000e+00 : f32
    %cst_17 = arith.constant 6.000000e+00 : f32
    %84 = vector.broadcast %cst_16 : f32 to vector<48x512xf32>
    %85 = arith.maximumf %84, %83 : vector<48x512xf32>
    %86 = vector.broadcast %cst_17 : f32 to vector<48x512xf32>
    %87 = arith.minimumf %86, %85 : vector<48x512xf32>
    %c0_18 = arith.constant 0 : index
    %c17 = arith.constant 17 : index
    %88 = vector.load %arg2[%c0_18, %c17] : memref<48x21xf32, #tpu.memory_space<vmem>>, vector<48x2xf32>
    %c0_19 = arith.constant 0 : index
    %c0_20 = arith.constant 0 : index
    %89 = vector.load %arg3[%c0_19, %c0_20] : memref<11x49xf32, #tpu.memory_space<vmem>>, vector<8x48xf32>
    %c0_21 = arith.constant 0 : index
    %c48 = arith.constant 48 : index
    %90 = vector.load %arg3[%c0_21, %c48] : memref<11x49xf32, #tpu.memory_space<vmem>>, vector<8x1xf32>
    %c10 = arith.constant 10 : index
    %c0_22 = arith.constant 0 : index
    %91 = vector.load %arg3[%c10, %c0_22] : memref<11x49xf32, #tpu.memory_space<vmem>>, vector<1x48xf32>
    %c8_23 = arith.constant 8 : index
    %c0_24 = arith.constant 0 : index
    %92 = vector.load %arg3[%c8_23, %c0_24] : memref<11x49xf32, #tpu.memory_space<vmem>>, vector<1x48xf32>
    %c9 = arith.constant 9 : index
    %c0_25 = arith.constant 0 : index
    %93 = vector.load %arg3[%c9, %c0_25] : memref<11x49xf32, #tpu.memory_space<vmem>>, vector<1x48xf32>
    %c8_26 = arith.constant 8 : index
    %c48_27 = arith.constant 48 : index
    %94 = vector.load %arg3[%c8_26, %c48_27] : memref<11x49xf32, #tpu.memory_space<vmem>>, vector<1x1xf32>
    %c9_28 = arith.constant 9 : index
    %c48_29 = arith.constant 48 : index
    %95 = vector.load %arg3[%c9_28, %c48_29] : memref<11x49xf32, #tpu.memory_space<vmem>>, vector<1x1xf32>
    %96 = vector.extract_strided_slice %87 {offsets = [0, 0], sizes = [48, 256], strides = [1, 1]} : vector<48x512xf32> to vector<48x256xf32>
    %cst_30 = arith.constant dense<0.000000e+00> : vector<48xf32>
    %97 = vector.multi_reduction <add>, %96, %cst_30 [1] : vector<48x256xf32> to vector<48xf32>
    %98 = vector.shape_cast %97 : vector<48xf32> to vector<48x1xf32>
    %cst_31 = arith.constant 3.906250e-03 : f32
    %99 = vector.broadcast %cst_31 : f32 to vector<48x1xf32>
    %100 = arith.mulf %98, %99 : vector<48x1xf32>
    %101 = vector.broadcast %100 : vector<48x1xf32> to vector<48x2xf32>
    %102 = arith.mulf %88, %101 : vector<48x2xf32>
    %cst_32 = arith.constant dense<0.000000e+00> : vector<2xf32>
    %103 = vector.multi_reduction <add>, %102, %cst_32 [0] : vector<48x2xf32> to vector<2xf32>
    %104 = vector.shape_cast %103 : vector<2xf32> to vector<1x2xf32>
    %105 = vector.extract_strided_slice %104 {offsets = [0, 0], sizes = [1, 1], strides = [1, 1]} : vector<1x2xf32> to vector<1x1xf32>
    %106 = arith.addf %105, %94 : vector<1x1xf32>
    %cst_33 = arith.constant 0.000000e+00 : f32
    %cst_34 = arith.constant 6.000000e+00 : f32
    %107 = vector.broadcast %cst_33 : f32 to vector<1x1xf32>
    %108 = arith.maximumf %107, %106 : vector<1x1xf32>
    %109 = vector.broadcast %cst_34 : f32 to vector<1x1xf32>
    %110 = arith.minimumf %109, %108 : vector<1x1xf32>
    %111 = vector.broadcast %110 : vector<1x1xf32> to vector<1x48xf32>
    %112 = arith.mulf %111, %92 : vector<1x48xf32>
    %113 = arith.addf %91, %112 : vector<1x48xf32>
    %114 = vector.extract_strided_slice %104 {offsets = [0, 1], sizes = [1, 1], strides = [1, 1]} : vector<1x2xf32> to vector<1x1xf32>
    %115 = arith.addf %114, %95 : vector<1x1xf32>
    %cst_35 = arith.constant 0.000000e+00 : f32
    %cst_36 = arith.constant 6.000000e+00 : f32
    %116 = vector.broadcast %cst_35 : f32 to vector<1x1xf32>
    %117 = arith.maximumf %116, %115 : vector<1x1xf32>
    %118 = vector.broadcast %cst_36 : f32 to vector<1x1xf32>
    %119 = arith.minimumf %118, %117 : vector<1x1xf32>
    %120 = vector.broadcast %119 : vector<1x1xf32> to vector<1x48xf32>
    %121 = arith.mulf %120, %93 : vector<1x48xf32>
    %122 = arith.addf %113, %121 : vector<1x48xf32>
    %cst_37 = arith.constant 0.000000e+00 : f32
    %123 = vector.broadcast %cst_37 : f32 to vector<1x48xf32>
    %124 = arith.subf %123, %122 : vector<1x48xf32>
    %125 = math.exp %124 : vector<1x48xf32>
    %cst_38 = arith.constant 1.000000e+00 : f32
    %126 = vector.broadcast %cst_38 : f32 to vector<1x48xf32>
    %127 = arith.addf %126, %125 : vector<1x48xf32>
    %128 = tpu.reciprocal %127 {approx = true} : vector<1x48xf32> -> vector<1x48xf32>
    %129 = vector.broadcast %128 : vector<1x48xf32> to vector<8x48xf32>
    %130 = arith.mulf %89, %129 : vector<8x48xf32>
    %cst_39 = arith.constant dense<0.000000e+00> : vector<8x256xf32>
    %131 = tpu.matmul %130, %96, %cst_39 {dimension_numbers = #tpu.dot_dimension_numbers<[1], [0], [0], [1], [0, 0, 1, 1], [], []>} : vector<8x48xf32>, vector<48x256xf32>, vector<8x256xf32> -> vector<8x256xf32>
    %132 = vector.broadcast %90 : vector<8x1xf32> to vector<8x256xf32>
    %133 = arith.addf %131, %132 : vector<8x256xf32>
    %134 = vector.extract_strided_slice %0 {offsets = [0, 0], sizes = [8, 256], strides = [1, 1]} : vector<8x512xf32> to vector<8x256xf32>
    %135 = arith.addf %133, %134 : vector<8x256xf32>
    %c0_40 = arith.constant 0 : index
    %c0_41 = arith.constant 0 : index
    %136 = vector.load %arg4[%c0_40, %c0_41] : memref<8x512xf32, #tpu.memory_space<vmem>>, vector<8x256xf32>
    tpu.vector_store %arg4[%c0_40, %c0_41], %135 {strides = array<i32>} : memref<8x512xf32, #tpu.memory_space<vmem>>, vector<8x256xf32>,
    %137 = vector.extract_strided_slice %87 {offsets = [0, 256], sizes = [48, 256], strides = [1, 1]} : vector<48x512xf32> to vector<48x256xf32>
    %cst_42 = arith.constant dense<0.000000e+00> : vector<48xf32>
    %138 = vector.multi_reduction <add>, %137, %cst_42 [1] : vector<48x256xf32> to vector<48xf32>
    %139 = vector.shape_cast %138 : vector<48xf32> to vector<48x1xf32>
    %cst_43 = arith.constant 3.906250e-03 : f32
    %140 = vector.broadcast %cst_43 : f32 to vector<48x1xf32>
    %141 = arith.mulf %139, %140 : vector<48x1xf32>
    %142 = vector.broadcast %141 : vector<48x1xf32> to vector<48x2xf32>
    %143 = arith.mulf %88, %142 : vector<48x2xf32>
    %cst_44 = arith.constant dense<0.000000e+00> : vector<2xf32>
    %144 = vector.multi_reduction <add>, %143, %cst_44 [0] : vector<48x2xf32> to vector<2xf32>
    %145 = vector.shape_cast %144 : vector<2xf32> to vector<1x2xf32>
    %146 = vector.extract_strided_slice %145 {offsets = [0, 0], sizes = [1, 1], strides = [1, 1]} : vector<1x2xf32> to vector<1x1xf32>
    %147 = arith.addf %146, %94 : vector<1x1xf32>
    %cst_45 = arith.constant 0.000000e+00 : f32
    %cst_46 = arith.constant 6.000000e+00 : f32
    %148 = vector.broadcast %cst_45 : f32 to vector<1x1xf32>
    %149 = arith.maximumf %148, %147 : vector<1x1xf32>
    %150 = vector.broadcast %cst_46 : f32 to vector<1x1xf32>
    %151 = arith.minimumf %150, %149 : vector<1x1xf32>
    %152 = vector.broadcast %151 : vector<1x1xf32> to vector<1x48xf32>
    %153 = arith.mulf %152, %92 : vector<1x48xf32>
    %154 = arith.addf %91, %153 : vector<1x48xf32>
    %155 = vector.extract_strided_slice %145 {offsets = [0, 1], sizes = [1, 1], strides = [1, 1]} : vector<1x2xf32> to vector<1x1xf32>
    %156 = arith.addf %155, %95 : vector<1x1xf32>
    %cst_47 = arith.constant 0.000000e+00 : f32
    %cst_48 = arith.constant 6.000000e+00 : f32
    %157 = vector.broadcast %cst_47 : f32 to vector<1x1xf32>
    %158 = arith.maximumf %157, %156 : vector<1x1xf32>
    %159 = vector.broadcast %cst_48 : f32 to vector<1x1xf32>
    %160 = arith.minimumf %159, %158 : vector<1x1xf32>
    %161 = vector.broadcast %160 : vector<1x1xf32> to vector<1x48xf32>
    %162 = arith.mulf %161, %93 : vector<1x48xf32>
    %163 = arith.addf %154, %162 : vector<1x48xf32>
    %cst_49 = arith.constant 0.000000e+00 : f32
    %164 = vector.broadcast %cst_49 : f32 to vector<1x48xf32>
    %165 = arith.subf %164, %163 : vector<1x48xf32>
    %166 = math.exp %165 : vector<1x48xf32>
    %cst_50 = arith.constant 1.000000e+00 : f32
    %167 = vector.broadcast %cst_50 : f32 to vector<1x48xf32>
    %168 = arith.addf %167, %166 : vector<1x48xf32>
    %169 = tpu.reciprocal %168 {approx = true} : vector<1x48xf32> -> vector<1x48xf32>
    %170 = vector.broadcast %169 : vector<1x48xf32> to vector<8x48xf32>
    %171 = arith.mulf %89, %170 : vector<8x48xf32>
    %cst_51 = arith.constant dense<0.000000e+00> : vector<8x256xf32>
    %172 = tpu.matmul %171, %137, %cst_51 {dimension_numbers = #tpu.dot_dimension_numbers<[1], [0], [0], [1], [0, 0, 1, 1], [], []>} : vector<8x48xf32>, vector<48x256xf32>, vector<8x256xf32> -> vector<8x256xf32>
    %173 = vector.broadcast %90 : vector<8x1xf32> to vector<8x256xf32>
    %174 = arith.addf %172, %173 : vector<8x256xf32>
    %175 = vector.extract_strided_slice %0 {offsets = [0, 256], sizes = [8, 256], strides = [1, 1]} : vector<8x512xf32> to vector<8x256xf32>
    %176 = arith.addf %174, %175 : vector<8x256xf32>
    %c0_52 = arith.constant 0 : index
    %c256 = arith.constant 256 : index
    %177 = vector.load %arg4[%c0_52, %c256] : memref<8x512xf32, #tpu.memory_space<vmem>>, vector<8x256xf32>
    tpu.vector_store %arg4[%c0_52, %c256], %176 {strides = array<i32>} : memref<8x512xf32, #tpu.memory_space<vmem>>, vector<8x256xf32>,
    return
  }
  func.func @transform_0(%arg0: i32) -> (i32, i32) {
    %c0_i32 = arith.constant 0 : i32
    %c0_i32_0 = arith.constant 0 : i32
    %c0_i32_1 = arith.constant 0 : i32
    return %c0_i32, %c0_i32_0 : i32, i32
  }
  func.func @transform_1(%arg0: i32) -> (i32, i32) {
    %c0_i32 = arith.constant 0 : i32
    %c0_i32_0 = arith.constant 0 : i32
    %c0_i32_1 = arith.constant 0 : i32
    return %c0_i32, %c0_i32_0 : i32, i32
  }
  func.func @transform_2(%arg0: i32) -> (i32, i32) {
    %c0_i32 = arith.constant 0 : i32
    %c0_i32_0 = arith.constant 0 : i32
    %c0_i32_1 = arith.constant 0 : i32
    return %c0_i32, %c0_i32_0 : i32, i32
  }
  func.func @transform_3(%arg0: i32) -> (i32, i32) {
    %c0_i32 = arith.constant 0 : i32
    %c0_i32_0 = arith.constant 0 : i32
    %c0_i32_1 = arith.constant 0 : i32
    return %c0_i32, %c0_i32_0 : i32, i32
  }
}

</mosaic_0001>

<bundles_post_ra>
// kernel: mbconv_block.1
= control target key start
LH: loop header
LB: loop body
LE: loop exit
PB: predicated region body
PF: predicated region fallthrough
CT: control target
= control target key end

     0   :  { %v1802_v0 = vmov 19   ;;  %vm54_vm0 = vcmask 64512   ;;  %v1803_v11 = vmov 8   ;;  %v1804_v12 = vmov 9   ;;  %s1805_s5 = smov 1   ;;  %s1806_s6 = smov 127   ;;  %s3758_s1 = inlined_call_operand.vmem [shape: f32[48,21], index: 1, kind: input, shape index: {}]   ;;  %s3759_s0 = inlined_call_operand.vmem [shape: f32[8,512], index: 0, kind: input, shape index: {}]   ;;  %s3760_s2 = inlined_call_operand.vmem [shape: f32[11,49], index: 2, kind: input, shape index: {}]   ;;  %s3761_s3 = inlined_call_operand.vmem [shape: f32[8,512], index: 3, kind: output, shape index: {}]  }
   0x1   :  { %1742 = vset.pattern.permute.xlu1 %v1802_v0  ;;  %v1845_v1 = vld [vmem:[%s3758_s1 + $0x10] sm:$0xff]  ;;  %v14_v2 = vld [vmem:[%s3759_s0] sm:$0xff]  ;;  %v15_v3 = vld [vmem:[%s3759_s0 + $0x8] sm:$0xff]  ;;  %1741 = vset.pattern.permute.xlu0 %v1802_v0  ;;  %v255_v13 = vlaneseq  ;;  %s1814_s7 = smov 16   ;;  %s1815_s10 = smov 112  }
   0x2   :  { %36 = vperm.xlu1 %1742, %v1845_v1   ;;  %82 = vmatpush.msra.mxu0 %v14_v2  ;;  %v16_v4 = vld [vmem:[%s3759_s0 + $0x10] sm:$0xff]  ;;  %v17_v5 = vld [vmem:[%s3759_s0 + $0x18] sm:$0xff]  ;;  %v1863_v6 = vld [vmem:[%s3758_s1] sm:$0xff]  ;;  %s1817_s23 = smov 97   ;;  %s1818_s26 = smov 98  }
   0x3   :  { %117 = vmatpush.msra.mxu1 %v15_v3  ;;  %152 = vmatpush.msra.mxu2 %v16_v4  ;;  %v1874_v7 = vld [vmem:[%s3758_s1 + $0x20] sm:$0xff]  ;;  %v1882_v8 = vld [vmem:[%s3758_s1 + $0x18] sm:$0xff]  ;;  %v1888_v9 = vld [vmem:[%s3758_s1 + $0x8] sm:$0xff]  ;;  %v1948_v15 = vand.u32 127, %v255_v13 }
   0x4   :  { %187 = vmatpush.msra.mxu3 %v17_v5  ;;  %1693 = vmatmul.msk.f32.vlgmr.msra.gmra.mxu0 %vm54_vm0, %v1863_v6  ;;  %v1900_v10 = vld [vmem:[%s3758_s1 + $0x28] sm:$0xff] }
   0x5   :  { %1699 = vmatmul.msk.f32.vlgmr.msra.gmra.mxu1 %vm54_vm0, %v1863_v6  ;;  %1705 = vmatmul.msk.f32.vlgmr.msra.gmra.mxu2 %vm54_vm0, %v1863_v6  ;;  %3888 = vst [vmem:[#allocation2_spill] sm:$0xff] %v1948_v15  ;;  %v260_v17 = vand.u32 15, %v1948_v15  ;;  %v1958_v23 = vadd.s32 128, %v1948_v15  ;;  %v2022_v58 = vadd.s32 256, %v1948_v15  ;;  %vm368_vm9 = vcmp.lt.s32.totalorder %v1948_v15, 1 }
   0x6   :  { %1711 = vmatmul.msk.f32.vlgmr.msra.gmra.mxu3 %vm54_vm0, %v1863_v6  ;;  %26 = vperm.xlu0 %1741, %v1863_v6   ;;  %vm473_vm10 = vcmp.lt.s32.totalorder %v1948_v15, 127 }
   0x7   :  { %1743 = vset.pattern.permute.xlu2 %v1802_v0  ;;  %vm1953_vm1 = vcmp.le.s32.totalorder %v260_v17, 14  ;;  %3891 = vst [vmem:[#allocation3_spill] sm:$0xff] %v1958_v23  ;;  %v261_v29 = vand.u32 15, %v1958_v23  ;;  %vm1995_vm3 = vcmp.ge.s32.totalorder %v260_v17, 1  ;;  %v262_v0 = vand.u32 15, %v2022_v58 }
   0x8   :  { %46 = vperm.xlu2 %1743, %v1874_v7   ;;  %3902 = vst [vmem:[#allocation8_spill] sm:$0xff] %v2022_v58 }
   0x9   :  { %vm1973_vm2 = vcmp.le.s32.totalorder %v261_v29, 14  ;;  %vm2017_vm4 = vcmp.ge.s32.totalorder %v261_v29, 1  ;;  %vm2041_vm5 = vcmp.le.s32.totalorder %v262_v0, 14  ;;  %vm2085_vm7 = vcmp.ge.s32.totalorder %v262_v0, 1 }
   0xa   :  { %41 = vperm.xlu1 %1742, %v1882_v8  }
   0xc   :  { %1694 = vmatmul.msk.f32.gmra.mxu0 %vm54_vm0, %v1888_v9 }
   0xd   :  { %1700 = vmatmul.msk.f32.gmra.mxu1 %vm54_vm0, %v1888_v9  ;;  %1706 = vmatmul.msk.f32.gmra.mxu2 %vm54_vm0, %v1888_v9 }
   0xe   :  { %1712 = vmatmul.msk.f32.gmra.mxu3 %vm54_vm0, %v1888_v9  ;;  %31 = vperm.xlu0 %1741, %v1888_v9  }
  0x10   :  { %51 = vperm.xlu2 %1743, %v1900_v10  }
  0x12   :  { %1745 = vset.pattern.permute.xlu1 %v1803_v11 }
  0x13   :  { %503 = vperm.xlu1 %1745, %v1888_v9  }
  0x14   :  { %1695 = vmatmul.msk.f32.gmra.mxu0 %vm54_vm0, %v1845_v1 }
  0x15   :  { %1707 = vmatmul.msk.f32.gmra.mxu2 %vm54_vm0, %v1845_v1  ;;  %1701 = vmatmul.msk.f32.gmra.mxu1 %vm54_vm0, %v1845_v1 }
  0x16   :  { %1713 = vmatmul.msk.f32.gmra.mxu3 %vm54_vm0, %v1845_v1  ;;  %1744 = vset.pattern.permute.xlu0 %v1803_v11 }
  0x17   :  { %499 = vperm.xlu0 %1744, %v1863_v6  }
  0x18   :  { %1746 = vset.pattern.permute.xlu2 %v1803_v11 }
  0x19   :  { %507 = vperm.xlu2 %1746, %v1845_v1  }
  0x1b   :  { %511 = vperm.xlu1 %1745, %v1882_v8  }
  0x1c   :  { %1696 = vmatmul.msk.f32.gmra.mxu0 %vm54_vm0, %v1882_v8 }
  0x1d   :  { %1708 = vmatmul.msk.f32.gmra.mxu2 %vm54_vm0, %v1882_v8  ;;  %1702 = vmatmul.msk.f32.gmra.mxu1 %vm54_vm0, %v1882_v8 }
  0x1e   :  { %1714 = vmatmul.msk.f32.gmra.mxu3 %vm54_vm0, %v1882_v8 }
  0x1f   :  { %519 = vperm.xlu0 %1744, %v1900_v10  }
  0x21   :  { %515 = vperm.xlu2 %1746, %v1874_v7  }
  0x23   :  { %1747 = vset.pattern.permute.xlu1 %v1804_v12 }
  0x24   :  { %547 = vperm.xlu1 %1747, %v1863_v6   ;;  %1697 = vmatmul.msk.f32.gmra.mxu0 %vm54_vm0, %v1874_v7 }
  0x25   :  { %1709 = vmatmul.msk.f32.gmra.mxu2 %vm54_vm0, %v1874_v7  ;;  %1703 = vmatmul.msk.f32.gmra.mxu1 %vm54_vm0, %v1874_v7 }
  0x26   :  { %1715 = vmatmul.msk.f32.gmra.mxu3 %vm54_vm0, %v1874_v7 }
  0x27   :  { %1749 = vset.pattern.permute.xlu0 %v1804_v12 }
  0x29   :  { %1748 = vset.pattern.permute.xlu2 %v1804_v12  ;;  %v2046_v12 = vadd.s32 384, %v1948_v15 }
  0x2a   :  { %551 = vperm.xlu2 %1748, %v1888_v9  }
  0x2b   :  { %3906 = vst [vmem:[#allocation10_spill] sm:$0xff] %v2046_v12 }
  0x2c   :  { %1698 = vmatmul.msk.f32.gmra.mxu0 %vm54_vm0, %v1900_v10 }
  0x2d   :  { %1710 = vmatmul.msk.f32.gmra.mxu2 %vm54_vm0, %v1900_v10  ;;  %1704 = vmatmul.msk.f32.gmra.mxu1 %vm54_vm0, %v1900_v10 }
  0x2e   :  { %1716 = vmatmul.msk.f32.gmra.mxu3 %vm54_vm0, %v1900_v10 }
  0x74   :  { %v1985_v40 = vpop.permute.xlu1 %36 }
  0x78   :  { %v1946_v14 = vpop.permute.xlu0 %26 }
  0x80   :  { %v1965_v27 = vpop.permute.xlu0 %31 }
  0x81   :  { %v84_v16 = vpop.f32.mrf.mxu0 }
  0x82   :  { %v85_v18 = vadd.f32 %v84_v16, %v1946_v14  ;;  %v119_v19 = vpop.f32.mrf.mxu1 }
  0x83   :  { %v120_v21 = vadd.f32 %v119_v19, %v1946_v14  ;;  %v263_v19 = vand.u32 15, %v2046_v12  ;;  %v1809_v12 = vmov 12  }
  0x84   :  { %v207_v20 = vmax.f32 %v85_v18, 0.0 }
  0x85   :  { %v208_v25 = vmax.f32 %v120_v21, 0.0  ;;  %vm2064_vm6 = vcmp.le.s32.totalorder %v263_v19, 14  ;;  %vm2103_vm8 = vcmp.ge.s32.totalorder %v263_v19, 1 }
  0x86   :  { %v1960_v24 = vmin.f32 %v207_v20, 6.0 }
  0x87   :  { %v1970_v32 = vmin.f32 %v208_v25, 6.0 }
  0x88   :  { %3892 = vst [vmem:[#allocation4_spill] sm:$0xff] %v1960_v24  ;;  %v296_v26 = vsel %vm1953_vm1, %v1960_v24, 0.0  ;;  %v154_v50 = vpop.f32.mrf.mxu2  ;;  %v401_v53 = vsel %vm1995_vm3, %v1960_v24, 0.0  ;;  %v3783_v24 = vmov 14  }
  0x89   :  { %v87_v28 = vpop.f32.mrf.mxu0  ;;  %320 = vrot.lane.b32.xlu0 %v296_v26, %s1805_s5  ;;  %v297_v39 = vsel %vm1973_vm2, %v1970_v32, 0.0  ;;  %v155_v55 = vadd.f32 %v154_v50, %v1946_v14  ;;  %v189_v59 = vpop.f32.mrf.mxu3  ;;  %v402_v63 = vsel %vm2017_vm4, %v1970_v32, 0.0 }
  0x8a   :  { %v88_v30 = vadd.f32 %v87_v28, %v1965_v27  ;;  %v122_v31 = vpop.f32.mrf.mxu1  ;;  %v190_v4 = vadd.f32 %v189_v59, %v1946_v14  ;;  %v42_v50 = vpop.permute.xlu1 %41 }
  0x8b   :  { %v123_v34 = vadd.f32 %v122_v31, %v1965_v27  ;;  %v209_v61 = vmax.f32 %v155_v55, 0.0 }
  0x8c   :  { %v211_v33 = vmax.f32 %v88_v30, 0.0  ;;  %v210_v17 = vmax.f32 %v190_v4, 0.0 }
  0x8d   :  { %v212_v37 = vmax.f32 %v123_v34, 0.0  ;;  %v2035_v3 = vmin.f32 %v209_v61, 6.0 }
  0x8e   :  { %v1977_v36 = vmin.f32 %v211_v33, 6.0  ;;  %v2062_v28 = vmin.f32 %v210_v17, 6.0 }
  0x8f   :  { %v1991_v45 = vmin.f32 %v212_v37, 6.0  ;;  %3903 = vst [vmem:[#allocation9_spill] sm:$0xff] %v2035_v3  ;;  %v298_v14 = vsel %vm2041_vm5, %v2035_v3, 0.0 }
  0x90   :  { %3895 = vst [vmem:[#allocation5_spill] sm:$0xff] %v1977_v36  ;;  %v300_v38 = vsel %vm1953_vm1, %v1977_v36, 0.0  ;;  %v405_v60 = vsel %vm1995_vm3, %v1977_v36, 0.0  ;;  %v157_v62 = vpop.f32.mrf.mxu2 }
  0x91   :  { %v90_v41 = vpop.f32.mrf.mxu0  ;;  %322 = vrot.lane.b32.xlu1 %v300_v38, %s1805_s5  ;;  %332 = vrot.lane.b32.xlu0 %v297_v39, %s1805_s5  ;;  %3896 = vst [vmem:[#allocation6_spill] sm:$0xff] %v1991_v45  ;;  %v301_v52 = vsel %vm1973_vm2, %v1991_v45, 0.0  ;;  %v158_v2 = vadd.f32 %v157_v62, %v1965_v27  ;;  %v406_v16 = vsel %vm2017_vm4, %v1991_v45, 0.0  ;;  %v192_v18 = vpop.f32.mrf.mxu3 }
  0x92   :  { %v91_v42 = vadd.f32 %v90_v41, %v1985_v40  ;;  %v125_v43 = vpop.f32.mrf.mxu1  ;;  %v193_v25 = vadd.f32 %v192_v18, %v1965_v27  ;;  %3908 = vst [vmem:[#allocation12_spill] sm:$0xff] %v2062_v28  ;;  %v299_v27 = vsel %vm2064_vm6, %v2062_v28, 0.0  ;;  %v2119_v62 = vpop.permute.xlu2 %46 }
  0x93   :  { %v126_v44 = vadd.f32 %v125_v43, %v1985_v40  ;;  %v213_v13 = vmax.f32 %v158_v2, 0.0 }
  0x94   :  { %v215_v46 = vmax.f32 %v91_v42, 0.0  ;;  %v214_v30 = vmax.f32 %v193_v25, 0.0 }
  0x95   :  { %v216_v48 = vmax.f32 %v126_v44, 0.0  ;;  %v2058_v21 = vmin.f32 %v213_v13, 6.0 }
  0x96   :  { %v1993_v47 = vmin.f32 %v215_v46, 6.0  ;;  %v2080_v38 = vmin.f32 %v214_v30, 6.0 }
  0x97   :  { %v2010_v54 = vmin.f32 %v216_v48, 6.0  ;;  %3907 = vst [vmem:[#allocation11_spill] sm:$0xff] %v2058_v21  ;;  %v302_v34 = vsel %vm2041_vm5, %v2058_v21, 0.0 }
  0x98   :  { %3897 = vst [vmem:[#allocation7_spill] sm:$0xff] %v1993_v47  ;;  %v304_v51 = vsel %vm1953_vm1, %v1993_v47, 0.0  ;;  %v409_v5 = vsel %vm1995_vm3, %v1993_v47, 0.0  ;;  %v160_v20 = vpop.f32.mrf.mxu2  ;;  %v303_v46 = vsel %vm2064_vm6, %v2080_v38, 0.0  ;;  %v408_v4 = vsel %vm2103_vm8, %v2080_v38, 0.0 }
  0x99   :  { %324 = vrot.lane.b32.xlu2 %v304_v51, %s1805_s5  ;;  %334 = vrot.lane.b32.xlu1 %v301_v52, %s1805_s5  ;;  %v305_v56 = vsel %vm1973_vm2, %v2010_v54, 0.0  ;;  %v161_v26 = vadd.f32 %v160_v20, %v1985_v40  ;;  %v410_v33 = vsel %vm2017_vm4, %v2010_v54, 0.0  ;;  %v195_v37 = vpop.f32.mrf.mxu3  ;;  %3911 = vst [vmem:[#allocation13_spill] sm:$0xff] %v2080_v38  ;;  %v93_v48 = vpop.f32.mrf.mxu0 }
  0x9a   :  { %425 = vrot.lane.b32.xlu0 %v401_v53, %s1806_s6  ;;  %v196_v41 = vadd.f32 %v195_v37, %v1985_v40  ;;  %v403_v40 = vsel %vm2085_vm7, %v2035_v3, 0.0  ;;  %v94_v52 = vadd.f32 %v93_v48, %v42_v50  ;;  %v128_v61 = vpop.f32.mrf.mxu1  ;;  %v2136_v18 = vpop.permute.xlu2 %51 }
  0x9b   :  { %v217_v31 = vmax.f32 %v161_v26, 0.0  ;;  %v129_v0 = vadd.f32 %v128_v61, %v42_v50 }
  0x9c   :  { %v218_v43 = vmax.f32 %v196_v41, 0.0  ;;  %v219_v59 = vmax.f32 %v94_v52, 0.0 }
  0x9d   :  { %v2082_v39 = vmin.f32 %v217_v31, 6.0 }
  0x9e   :  { %v2101_v51 = vmin.f32 %v218_v43, 6.0 }
  0x9f   :  { %v306_v44 = vsel %vm2041_vm5, %v2082_v39, 0.0  ;;  %v411_v2 = vsel %vm2085_vm7, %v2082_v39, 0.0 }
  0xa0   :  { %3914 = vst [vmem:[#allocation14_spill] sm:$0xff] %v2101_v51  ;;  %v307_v55 = vsel %vm2064_vm6, %v2101_v51, 0.0  ;;  %v412_v20 = vsel %vm2103_vm8, %v2101_v51, 0.0  ;;  %v163_v41 = vpop.f32.mrf.mxu2 }
  0xa1   :  { %336 = vrot.lane.b32.xlu2 %v305_v56, %s1805_s5  ;;  %427 = vrot.lane.b32.xlu1 %v405_v60, %s1806_s6  ;;  %v407_v56 = vsel %vm2085_vm7, %v2058_v21, 0.0  ;;  %v404_v60 = vsel %vm2103_vm8, %v2062_v28, 0.0  ;;  %v96_v13 = vpop.f32.mrf.mxu0  ;;  %v198_v61 = vpop.f32.mrf.mxu3  ;;  %v3790_v28 = vmov 16  }
  0xa2   :  { %437 = vrot.lane.b32.xlu0 %v402_v63, %s1806_s6  ;;  %v2121_v63 = vmin.f32 %v219_v59, 6.0  ;;  %v97_v17 = vadd.f32 %v96_v13, %v2119_v62  ;;  %v131_v30 = vpop.f32.mrf.mxu1  ;;  %v1807_v59 = vmov 10  }
  0xa3   :  { %v132_v31 = vadd.f32 %v131_v30, %v2119_v62 }
  0xa4   :  { %3917 = vst [vmem:[#allocation15_spill] sm:$0xff] %v2121_v63  ;;  %v223_v19 = vmax.f32 %v97_v17, 0.0  ;;  %v413_v37 = vsel %vm1995_vm3, %v2121_v63, 0.0  ;;  %v2185_v17 = vpop.permute.xlu0 %499 }
  0xa5   :  { %3925 = vst [vmem:[#allocation23_spill] sm:$0xff] %v2185_v17 }
  0xa6   :  { %v2148_v26 = vmin.f32 %v223_v19, 6.0 }
  0xa8   :  { %3919 = vst [vmem:[#allocation17_spill] sm:$0xff] %v2148_v26  ;;  %v417_v19 = vsel %vm1995_vm3, %v2148_v26, 0.0 }
  0xa9   :  { %429 = vrot.lane.b32.xlu2 %v409_v5, %s1806_s6  ;;  %439 = vrot.lane.b32.xlu1 %v406_v16, %s1806_s6  ;;  %v220_v5 = vmax.f32 %v129_v0, 0.0  ;;  %v308_v16 = vsel %vm1953_vm1, %v2121_v63, 0.0  ;;  %v99_v43 = vpop.f32.mrf.mxu0  ;;  %v1810_v63 = vmov 13  }
  0xaa   :  { %344 = vrot.lane.b32.xlu0 %v298_v14, %s1805_s5  ;;  %v134_v0 = vpop.f32.mrf.mxu1 }
  0xab   :  { %v2138_v14 = vmin.f32 %v220_v5, 6.0  ;;  %v135_v13 = vadd.f32 %v134_v0, %v2136_v18 }
  0xad   :  { %3918 = vst [vmem:[#allocation16_spill] sm:$0xff] %v2138_v14  ;;  %v309_v25 = vsel %vm1973_vm2, %v2138_v14, 0.0 }
  0xb1   :  { %441 = vrot.lane.b32.xlu2 %v410_v33, %s1806_s6  ;;  %346 = vrot.lane.b32.xlu1 %v302_v34, %s1805_s5  ;;  %v312_v33 = vsel %vm1953_vm1, %v2148_v26, 0.0  ;;  %v2155_v34 = vpop.permute.xlu2 %507 }
  0xb2   :  { %356 = vrot.lane.b32.xlu0 %v299_v27, %s1805_s5  ;;  %v224_v27 = vmax.f32 %v132_v31, 0.0 }
  0xb9   :  { %348 = vrot.lane.b32.xlu2 %v306_v44, %s1805_s5  ;;  %358 = vrot.lane.b32.xlu1 %v303_v46, %s1805_s5  ;;  %v2163_v44 = vmin.f32 %v224_v27, 6.0  ;;  %v164_v46 = vadd.f32 %v163_v41, %v42_v50  ;;  %v2169_v52 = vpop.permute.xlu2 %515 }
  0xba   :  { %449 = vrot.lane.b32.xlu0 %v403_v40, %s1806_s6  ;;  %v100_v40 = vadd.f32 %v99_v43, %v2136_v18  ;;  %3921 = vst [vmem:[#allocation19_spill] sm:$0xff] %v2169_v52 }
  0xbb   :  { %3920 = vst [vmem:[#allocation18_spill] sm:$0xff] %v2163_v44  ;;  %v313_v48 = vsel %vm1973_vm2, %v2163_v44, 0.0  ;;  %v418_v22 = vsel %vm2017_vm4, %v2163_v44, 0.0 }
  0xc1   :  { %360 = vrot.lane.b32.xlu2 %v307_v55, %s1805_s5  ;;  %451 = vrot.lane.b32.xlu1 %v407_v56, %s1806_s6  ;;  %v221_v55 = vmax.f32 %v164_v46, 0.0  ;;  %v227_v56 = vmax.f32 %v100_v40, 0.0  ;;  %v2199_v31 = vpop.permute.xlu2 %551 }
  0xc2   :  { %461 = vrot.lane.b32.xlu0 %v404_v60, %s1806_s6  ;;  %v414_v60 = vsel %vm2017_vm4, %v2138_v14, 0.0  ;;  %3926 = vst [vmem:[#allocation24_spill] sm:$0xff] %v2199_v31 }
  0xc3   :  { %v2180_v5 = vmin.f32 %v227_v56, 6.0  ;;  %v201_v56 = vpop.f32.mrf.mxu3 }
  0xc4   :  { %v202_v0 = vadd.f32 %v201_v56, %v2119_v62 }
  0xc5   :  { %3923 = vst [vmem:[#allocation21_spill] sm:$0xff] %v2180_v5  ;;  %v316_v30 = vsel %vm1953_vm1, %v2180_v5, 0.0 }
  0xc9   :  { %453 = vrot.lane.b32.xlu2 %v411_v2, %s1806_s6  ;;  %463 = vrot.lane.b32.xlu1 %v408_v4, %s1806_s6  ;;  %v2178_v2 = vmin.f32 %v221_v55, 6.0  ;;  %v199_v4 = vadd.f32 %v198_v61, %v42_v50  ;;  %v2218_v55 = vpop.permute.xlu0 %519 }
  0xca   :  { %326 = vrot.lane.b32.xlu0 %v308_v16, %s1805_s5  ;;  %v2183_v16 = vpop.permute.xlu1 %503 }
  0xcb   :  { %3922 = vst [vmem:[#allocation20_spill] sm:$0xff] %v2178_v2  ;;  %v310_v50 = vsel %vm2041_vm5, %v2178_v2, 0.0  ;;  %v415_v35 = vsel %vm2085_vm7, %v2178_v2, 0.0 }
  0xcc   :  { %3924 = vst [vmem:[#allocation22_spill] sm:$0xff] %v2183_v16 }
  0xd1   :  { %465 = vrot.lane.b32.xlu2 %v412_v20, %s1806_s6  ;;  %559 = vperm.xlu1 %1747, %v1882_v8   ;;  %v222_v20 = vmax.f32 %v199_v4, 0.0  ;;  %v226_v4 = vmax.f32 %v202_v0, 0.0 }
  0xd2   :  { %338 = vrot.lane.b32.xlu0 %v309_v25, %s1805_s5  ;;  %v228_v25 = vmax.f32 %v135_v13, 0.0  ;;  %v2206_v43 = vpop.permute.xlu1 %511 }
  0xd3   :  { %3929 = vst [vmem:[#allocation27_spill] sm:$0xff] %v2206_v43 }
  0xd4   :  { %v2204_v41 = vmin.f32 %v228_v25, 6.0 }
  0xd6   :  { %3928 = vst [vmem:[#allocation26_spill] sm:$0xff] %v2204_v41 }
  0xd9   :  { %563 = vperm.xlu2 %1748, %v1874_v7   ;;  %328 = vrot.lane.b32.xlu1 %v312_v33, %s1805_s5  ;;  %v166_v33 = vpop.f32.mrf.mxu2 }
  0xda   :  { %431 = vrot.lane.b32.xlu0 %v413_v37, %s1806_s6  ;;  %v167_v27 = vadd.f32 %v166_v33, %v2119_v62  ;;  %v2202_v37 = vmin.f32 %v222_v20, 6.0  ;;  %v2237_v20 = vpop.permute.xlu1 %547 }
  0xdb   :  { %3931 = vst [vmem:[#allocation29_spill] sm:$0xff] %v2237_v20 }
  0xdc   :  { %3927 = vst [vmem:[#allocation25_spill] sm:$0xff] %v2202_v37  ;;  %v225_v46 = vmax.f32 %v167_v27, 0.0  ;;  %v311_v40 = vsel %vm2064_vm6, %v2202_v37, 0.0 }
  0xde   :  { %v2224_v61 = vmin.f32 %v225_v46, 6.0  ;;  %v416_v46 = vsel %vm2103_vm8, %v2202_v37, 0.0 }
  0xe0   :  { %3930 = vst [vmem:[#allocation28_spill] sm:$0xff] %v2224_v61  ;;  %v314_v13 = vsel %vm2041_vm5, %v2224_v61, 0.0 }
  0xe1   :  { %1750 = vset.pattern.permute.xlu2 %v1807_v59  ;;  %340 = vrot.lane.b32.xlu1 %v313_v48, %s1805_s5  ;;  %v317_v48 = vsel %vm1973_vm2, %v2204_v41, 0.0  ;;  %v169_v25 = vpop.f32.mrf.mxu2 }
  0xe2   :  { %443 = vrot.lane.b32.xlu0 %v414_v60, %s1806_s6  ;;  %619 = vperm.xlu2 %1750, %v1863_v6   ;;  %v170_v33 = vadd.f32 %v169_v25, %v2136_v18 }
  0xe4   :  { %v229_v49 = vmax.f32 %v170_v33, 0.0 }
  0xe9   :  { %433 = vrot.lane.b32.xlu1 %v417_v19, %s1806_s6  ;;  %v421_v19 = vsel %vm1995_vm3, %v2180_v5, 0.0 }
  0xea   :  { %350 = vrot.lane.b32.xlu0 %v310_v50, %s1805_s5  ;;  %330 = vrot.lane.b32.xlu2 %v316_v30, %s1805_s5  ;;  %v2243_v30 = vmin.f32 %v226_v4, 6.0  ;;  %v2265_v4 = vmin.f32 %v229_v49, 6.0 }
  0xec   :  { %3932 = vst [vmem:[#allocation30_spill] sm:$0xff] %v2243_v30  ;;  %v315_v27 = vsel %vm2064_vm6, %v2243_v30, 0.0  ;;  %v318_v25 = vsel %vm2041_vm5, %v2265_v4, 0.0  ;;  %v423_v29 = vsel %vm2085_vm7, %v2265_v4, 0.0  ;;  %vm1462_vm5 = vcmask 154760  }
  0xed   :  { %3933 = vst [vmem:[#allocation31_spill] sm:$0xff] %v2265_v4 }
  0xf1   :  { %445 = vrot.lane.b32.xlu1 %v418_v22, %s1806_s6  ;;  %v422_v22 = vsel %vm2017_vm4, %v2204_v41, 0.0 }
  0xf2   :  { %362 = vrot.lane.b32.xlu0 %v311_v40, %s1805_s5  ;;  %342 = vrot.lane.b32.xlu2 %v317_v48, %s1805_s5  ;;  %v204_v40 = vpop.f32.mrf.mxu3 }
  0xf3   :  { %v2222_v60 = vpop.permute.xlu2 %324 }
  0xf9   :  { %352 = vrot.lane.b32.xlu1 %v314_v13, %s1805_s5  ;;  %v205_v13 = vadd.f32 %v204_v40, %v2136_v18 }
  0xfa   :  { %455 = vrot.lane.b32.xlu0 %v415_v35, %s1806_s6  ;;  %435 = vrot.lane.b32.xlu2 %v421_v19, %s1806_s6  ;;  %v419_v35 = vsel %vm2085_vm7, %v2224_v61, 0.0 }
  0xfb   :  { %v2241_v62 = vpop.permute.xlu2 %336  ;;  %v321_v50 = vpop.permute.xlu0 %320  ;;  %v230_v19 = vmax.f32 %v205_v13, 0.0 }
  0xfd   :  { %v2286_v49 = vmin.f32 %v230_v19, 6.0  ;;  %v1808_v19 = vmov 11  }
  0xff   :  { %3934 = vst [vmem:[#allocation32_spill] sm:$0xff] %v2286_v49  ;;  %v319_v11 = vsel %vm2064_vm6, %v2286_v49, 0.0  ;;  %v424_v23 = vsel %vm2103_vm8, %v2286_v49, 0.0  ;;  %vm1520_vm6 = vcmask 392192  }
 0x101   :  { %364 = vrot.lane.b32.xlu1 %v315_v27, %s1805_s5 }
 0x102   :  { %467 = vrot.lane.b32.xlu0 %v416_v46, %s1806_s6  ;;  %447 = vrot.lane.b32.xlu2 %v422_v22, %s1806_s6  ;;  %v420_v46 = vsel %vm2103_vm8, %v2243_v30, 0.0  ;;  %v3796_v30 = vmov 15  }
 0x103   :  { %v2258_v48 = vpop.permute.xlu2 %429  ;;  %v2260_v56 = vpop.permute.xlu1 %322 }
 0x104   :  { %v2263_v0 = vpop.permute.xlu0 %332 }
 0x105   :  { %v2271_v57 = vsel %vm368_vm9, %v321_v50, %v2263_v0 }
 0x109   :  { %457 = vrot.lane.b32.xlu1 %v419_v35, %s1806_s6 }
 0x10a   :  { %555 = vperm.xlu0 %1749, %v1845_v1   ;;  %354 = vrot.lane.b32.xlu2 %v318_v25, %s1805_s5 }
 0x10b   :  { %v2282_v18 = vpop.permute.xlu2 %441  ;;  %v2284_v33 = vpop.permute.xlu1 %334 }
 0x10c   :  { %v426_v27 = vpop.permute.xlu0 %425 }
 0x111   :  { %469 = vrot.lane.b32.xlu1 %v420_v46, %s1806_s6 }
 0x112   :  { %1751 = vset.pattern.permute.xlu0 %v1807_v59  ;;  %366 = vrot.lane.b32.xlu2 %v319_v11, %s1805_s5 }
 0x113   :  { %623 = vperm.xlu0 %1751, %v1888_v9   ;;  %v2298_v22 = vpop.permute.xlu2 %348  ;;  %v2300_v40 = vpop.permute.xlu1 %427 }
 0x114   :  { %v438_v13 = vpop.permute.xlu0 %437 }
 0x115   :  { %v2305_v35 = vsel %vm473_vm10, %v426_v27, %v438_v13 }
 0x116   :  { %3935 = vst [vmem:[#allocation33_spill] sm:$0xff] %v2305_v35 }
 0x119   :  { %567 = vperm.xlu1 %1747, %v1900_v10  }
 0x11a   :  { %459 = vrot.lane.b32.xlu2 %v423_v29, %s1806_s6 }
 0x11b   :  { %1753 = vset.pattern.permute.xlu0 %v1808_v19  ;;  %v2312_v25 = vpop.permute.xlu2 %360  ;;  %v2314_v46 = vpop.permute.xlu1 %439 }
 0x11c   :  { %691 = vperm.xlu0 %1753, %v1863_v6   ;;  %v2317_v11 = vpop.permute.xlu0 %344 }
 0x11d   :  { %v2401_v44 = vsel %vm368_vm9, %v2263_v0, %v2317_v11 }
 0x11e   :  { %3948 = vst [vmem:[#allocation46_spill] sm:$0xff] %v2401_v44 }
 0x121   :  { %1752 = vset.pattern.permute.xlu1 %v1807_v59 }
 0x122   :  { %471 = vrot.lane.b32.xlu2 %v424_v23, %s1806_s6  ;;  %627 = vperm.xlu1 %1752, %v1845_v1  }
 0x123   :  { %v2325_v42 = vpop.permute.xlu2 %453  ;;  %v2327_v29 = vpop.permute.xlu1 %346 }
 0x124   :  { %3936 = vst [vmem:[#allocation34_spill] sm:$0xff] %v2325_v42  ;;  %711 = vperm.xlu0 %1753, %v1900_v10   ;;  %v357_v58 = vpop.permute.xlu0 %356  ;;  %v572_v42 = vmul.f32 %v2237_v20, %v2035_v3 }
 0x125   :  { %v2333_v52 = vsel %vm368_vm9, %v2317_v11, %v357_v58  ;;  %v2337_v53 = vsel %vm368_vm9, %v357_v58, %v321_v50 }
 0x126   :  { %3937 = vst [vmem:[#allocation35_spill] sm:$0xff] %v2333_v52 }
 0x127   :  { %3938 = vst [vmem:[#allocation36_spill] sm:$0xff] %v2337_v53 }
 0x12a   :  { %631 = vperm.xlu2 %1750, %v1882_v8   ;;  %635 = vperm.xlu1 %1752, %v1874_v7  }
 0x12b   :  { %v2341_v23 = vpop.permute.xlu2 %465  ;;  %v2343_v59 = vpop.permute.xlu1 %358 }
 0x12c   :  { %1758 = vset.pattern.permute.xlu0 %v1809_v12  ;;  %v450_v43 = vpop.permute.xlu0 %449 }
 0x12d   :  { %v2347_v37 = vsel %vm473_vm10, %v438_v13, %v450_v43  ;;  %747 = vperm.xlu0 %1758, %v1845_v1  }
 0x132   :  { %639 = vperm.xlu2 %1750, %v1900_v10   ;;  %1754 = vset.pattern.permute.xlu1 %v1808_v19 }
 0x133   :  { %v2351_v58 = vpop.permute.xlu2 %563  ;;  %695 = vperm.xlu1 %1754, %v1888_v9   ;;  %v2354_v50 = vpop.permute.xlu1 %451 }
 0x134   :  { %3939 = vst [vmem:[#allocation37_spill] sm:$0xff] %v2351_v58  ;;  %v462_v2 = vpop.permute.xlu0 %461 }
 0x135   :  { %3940 = vst [vmem:[#allocation38_spill] sm:$0xff] %v2354_v50  ;;  %v2358_v14 = vsel %vm473_vm10, %v462_v2, %v426_v27  ;;  %1760 = vset.pattern.permute.xlu0 %v1810_v63  ;;  %v2408_v26 = vsel %vm473_vm10, %v450_v43, %v462_v2 }
 0x136   :  { %3941 = vst [vmem:[#allocation39_spill] sm:$0xff] %v2358_v14  ;;  %815 = vperm.xlu0 %1760, %v1888_v9  }
 0x137   :  { %3949 = vst [vmem:[#allocation47_spill] sm:$0xff] %v2408_v26 }
 0x13a   :  { %1755 = vset.pattern.permute.xlu2 %v1808_v19 }
 0x13b   :  { %699 = vperm.xlu2 %1755, %v1845_v1   ;;  %703 = vperm.xlu1 %1754, %v1882_v8   ;;  %v2363_v13 = vpop.permute.xlu1 %463 }
 0x13c   :  { %v327_v58 = vpop.permute.xlu0 %326  ;;  %v2365_v35 = vpop.permute.xlu2 %619 }
 0x13d   :  { %3942 = vst [vmem:[#allocation40_spill] sm:$0xff] %v2365_v35 }
 0x13e   :  { %1762 = vset.pattern.permute.xlu0 %v3783_v24 }
 0x13f   :  { %883 = vperm.xlu0 %1762, %v1863_v6  }
 0x143   :  { %707 = vperm.xlu2 %1755, %v1874_v7   ;;  %1756 = vset.pattern.permute.xlu1 %v1809_v12  ;;  %v2370_v27 = vpop.permute.xlu1 %559 }
 0x144   :  { %3943 = vst [vmem:[#allocation41_spill] sm:$0xff] %v2370_v27  ;;  %v339_v19 = vpop.permute.xlu0 %338  ;;  %v2372_v14 = vpop.permute.xlu2 %330  ;;  %739 = vperm.xlu1 %1756, %v1863_v6  }
 0x145   :  { %v2377_v53 = vsel %vm368_vm9, %v327_v58, %v339_v19 }
 0x146   :  { %3944 = vst [vmem:[#allocation42_spill] sm:$0xff] %v2377_v53 }
 0x147   :  { %1770 = vset.pattern.permute.xlu0 %v3790_v28 }
 0x148   :  { %1011 = vperm.xlu0 %1770, %v1845_v1  }
 0x14b   :  { %1757 = vset.pattern.permute.xlu2 %v1809_v12  ;;  %v2381_v24 = vpop.permute.xlu1 %328 }
 0x14c   :  { %3945 = vst [vmem:[#allocation43_spill] sm:$0xff] %v2381_v24  ;;  %v432_v52 = vpop.permute.xlu0 %431  ;;  %743 = vperm.xlu2 %1757, %v1888_v9   ;;  %v2384_v27 = vpop.permute.xlu2 %342  ;;  %751 = vperm.xlu1 %1756, %v1882_v8  }
 0x150   :  { %1771 = vset.pattern.permute.xlu0 %v3796_v30  ;;  %v524_v30 = vmul.f32 %v2185_v17, %v2401_v44 }
 0x151   :  { %935 = vperm.xlu0 %1771, %v1888_v9  }
 0x152   :  { %v596_v2 = vadd.f32 %v572_v42, %v524_v30 }
 0x153   :  { %v2389_v53 = vpop.permute.xlu1 %340 }
 0x154   :  { %3946 = vst [vmem:[#allocation44_spill] sm:$0xff] %v2389_v53  ;;  %v444_v28 = vpop.permute.xlu0 %443  ;;  %755 = vperm.xlu2 %1757, %v1874_v7   ;;  %v436_v12 = vpop.permute.xlu2 %435  ;;  %759 = vperm.xlu1 %1756, %v1900_v10  }
 0x155   :  { %v2395_v61 = vsel %vm473_vm10, %v432_v52, %v444_v28 }
 0x156   :  { %3947 = vst [vmem:[#allocation45_spill] sm:$0xff] %v2395_v61  ;;  %v644_v61 = vmul.f32 %v2365_v35, %v2408_v26 }
 0x158   :  { %v668_v43 = vadd.f32 %v644_v61, %v596_v2 }
 0x159   :  { %951 = vperm.xlu0 %1771, %v1900_v10  }
 0x15b   :  { %v434_v24 = vpop.permute.xlu1 %433 }
 0x15c   :  { %v351_v50 = vpop.permute.xlu0 %350  ;;  %1759 = vset.pattern.permute.xlu2 %v1810_v63  ;;  %v448_v0 = vpop.permute.xlu2 %447  ;;  %1761 = vset.pattern.permute.xlu1 %v1810_v63 }
 0x15d   :  { %v2416_v11 = vsel %vm368_vm9, %v339_v19, %v351_v50  ;;  %v2420_v44 = vsel %vm473_vm10, %v436_v12, %v448_v0  ;;  %811 = vperm.xlu2 %1759, %v1863_v6   ;;  %819 = vperm.xlu1 %1761, %v1845_v1  }
 0x15e   :  { %3950 = vst [vmem:[#allocation48_spill] sm:$0xff] %v2416_v11 }
 0x15f   :  { %3951 = vst [vmem:[#allocation49_spill] sm:$0xff] %v2420_v44 }
 0x161   :  { %1098 = vrot.lane.b32.xlu0 %v668_v43, %s1814_s7 }
 0x163   :  { %v446_v26 = vpop.permute.xlu1 %445 }
 0x164   :  { %v2427_v63 = vsel %vm473_vm10, %v434_v24, %v446_v26  ;;  %v363_v19 = vpop.permute.xlu0 %362  ;;  %v355_v11 = vpop.permute.xlu2 %354 }
 0x165   :  { %3952 = vst [vmem:[#allocation50_spill] sm:$0xff] %v2427_v63  ;;  %v2431_v3 = vsel %vm368_vm9, %v351_v50, %v363_v19  ;;  %v2435_v36 = vsel %vm368_vm9, %v363_v19, %v327_v58  ;;  %v2440_v61 = vsel %vm368_vm9, %v2384_v27, %v355_v11  ;;  %823 = vperm.xlu2 %1759, %v1882_v8   ;;  %v3959_v19 = vmov 14  }
 0x166   :  { %3953 = vst [vmem:[#allocation51_spill] sm:$0xff] %v2431_v3  ;;  %827 = vperm.xlu1 %1761, %v1874_v7  }
 0x167   :  { %3954 = vst [vmem:[#allocation52_spill] sm:$0xff] %v2435_v36 }
 0x168   :  { %3955 = vst [vmem:[#allocation53_spill] sm:$0xff] %v2440_v61 }
 0x16b   :  { %v353_v30 = vpop.permute.xlu1 %352 }
 0x16c   :  { %v2447_v42 = vsel %vm368_vm9, %v2389_v53, %v353_v30  ;;  %v456_v50 = vpop.permute.xlu0 %455  ;;  %v367_v2 = vpop.permute.xlu2 %366 }
 0x16d   :  { %3956 = vst [vmem:[#allocation54_spill] sm:$0xff] %v2447_v42  ;;  %v2451_v58 = vsel %vm473_vm10, %v444_v28, %v456_v50  ;;  %v2455_v43 = vsel %vm368_vm9, %v355_v11, %v367_v2  ;;  %831 = vperm.xlu2 %1759, %v1900_v10  }
 0x16e   :  { %3957 = vst [vmem:[#allocation55_spill] sm:$0xff] %v2451_v58  ;;  %1763 = vset.pattern.permute.xlu1 %v3959_v19 }
 0x16f   :  { %3958 = vst [vmem:[#allocation56_spill] sm:$0xff] %v2455_v43  ;;  %887 = vperm.xlu1 %1763, %v1888_v9  }
 0x173   :  { %v2460_v63 = vpop.permute.xlu1 %364 }
 0x174   :  { %3960 = vst [vmem:[#allocation57_spill] sm:$0xff] %v2460_v63  ;;  %v2465_v3 = vsel %vm368_vm9, %v353_v30, %v2460_v63  ;;  %v468_v36 = vpop.permute.xlu0 %467  ;;  %v460_v28 = vpop.permute.xlu2 %459  ;;  %v577_v63 = vmul.f32 %v2199_v31, %v2080_v38 }
 0x175   :  { %3961 = vst [vmem:[#allocation58_spill] sm:$0xff] %v2465_v3  ;;  %v2469_v58 = vsel %vm473_vm10, %v456_v50, %v468_v36  ;;  %v2473_v11 = vsel %vm473_vm10, %v468_v36, %v432_v52  ;;  %1764 = vset.pattern.permute.xlu2 %v3959_v19  ;;  %v2478_v42 = vsel %vm473_vm10, %v448_v0, %v460_v28  ;;  %v3968_v0 = vmov 15  }
 0x176   :  { %3962 = vst [vmem:[#allocation59_spill] sm:$0xff] %v2469_v58  ;;  %891 = vperm.xlu2 %1764, %v1845_v1  }
 0x177   :  { %3963 = vst [vmem:[#allocation60_spill] sm:$0xff] %v2473_v11  ;;  %895 = vperm.xlu1 %1763, %v1882_v8   ;;  %v2501_v11 = vsel %vm368_vm9, %v2327_v29, %v2343_v59 }
 0x178   :  { %3964 = vst [vmem:[#allocation61_spill] sm:$0xff] %v2478_v42 }
 0x179   :  { %3969 = vst [vmem:[#allocation65_spill] sm:$0xff] %v2501_v11 }
 0x17b   :  { %v458_v30 = vpop.permute.xlu1 %457 }
 0x17c   :  { %v2484_v3 = vsel %vm473_vm10, %v446_v26, %v458_v30  ;;  %v2486_v50 = vpop.permute.xlu0 %555  ;;  %v472_v58 = vpop.permute.xlu2 %471  ;;  %v529_v26 = vmul.f32 %v2183_v16, %v2501_v11  ;;  %v3975_v11 = vmov 16  }
 0x17d   :  { %3965 = vst [vmem:[#allocation62_spill] sm:$0xff] %v2484_v3  ;;  %v2490_v36 = vsel %vm473_vm10, %v460_v28, %v472_v58  ;;  %v2494_v52 = vsel %vm473_vm10, %v472_v58, %v436_v12 }
 0x17e   :  { %3966 = vst [vmem:[#allocation63_spill] sm:$0xff] %v2490_v36  ;;  %1765 = vset.pattern.permute.xlu2 %v3968_v0 }
 0x17f   :  { %3967 = vst [vmem:[#allocation64_spill] sm:$0xff] %v2494_v52  ;;  %1766 = vset.pattern.permute.xlu1 %v3968_v0  ;;  %931 = vperm.xlu2 %1765, %v1863_v6  }
 0x180   :  { %939 = vperm.xlu1 %1766, %v1845_v1   ;;  %v2524_v1 = vsel %vm473_vm10, %v2363_v13, %v2300_v40 }
 0x181   :  { %3973 = vst [vmem:[#allocation69_spill] sm:$0xff] %v2524_v1 }
 0x183   :  { %v470_v28 = vpop.permute.xlu1 %469 }
 0x184   :  { %v2510_v12 = vsel %vm473_vm10, %v458_v30, %v470_v28  ;;  %v2514_v58 = vsel %vm473_vm10, %v470_v28, %v434_v24  ;;  %v2516_v3 = vpop.permute.xlu2 %631  ;;  %v2535_v24 = vsel %vm368_vm9, %v2372_v14, %v2384_v27  ;;  %v2540_v28 = vsel %vm368_vm9, %v367_v2, %v2372_v14 }
 0x185   :  { %3970 = vst [vmem:[#allocation66_spill] sm:$0xff] %v2510_v12  ;;  %v2526_v53 = vpop.permute.xlu0 %623  ;;  %v601_v12 = vadd.f32 %v577_v63, %v529_v26  ;;  %v543_v63 = vmul.f32 %v2218_v55, %v2535_v24  ;;  %v544_v27 = vmul.f32 %v2218_v55, %v2440_v61  ;;  %v542_v26 = vmul.f32 %v2218_v55, %v2540_v28 }
 0x186   :  { %3971 = vst [vmem:[#allocation67_spill] sm:$0xff] %v2514_v58  ;;  %v649_v30 = vmul.f32 %v2526_v53, %v2524_v1  ;;  %v545_v14 = vmul.f32 %v2218_v55, %v2455_v43 }
 0x187   :  { %3972 = vst [vmem:[#allocation68_spill] sm:$0xff] %v2516_v3  ;;  %1767 = vset.pattern.permute.xlu2 %v3975_v11 }
 0x188   :  { %3974 = vst [vmem:[#allocation70_spill] sm:$0xff] %v2526_v53  ;;  %1768 = vset.pattern.permute.xlu1 %v3975_v11  ;;  %1003 = vperm.xlu2 %1767, %v1863_v6   ;;  %v673_v3 = vadd.f32 %v649_v30, %v601_v12 }
 0x189   :  { %3976 = vst [vmem:[#allocation71_spill] sm:$0xff] %v2535_v24  ;;  %1007 = vperm.xlu1 %1768, %v1888_v9  }
 0x18a   :  { %3977 = vst [vmem:[#allocation72_spill] sm:$0xff] %v2540_v28  ;;  %1112 = vrot.lane.b32.xlu0 %v673_v3, %s1814_s7 }
 0x18b   :  { %v568_v2 = vpop.permute.xlu1 %567 }
 0x18c   :  { %v590_v6 = vmul.f32 %v568_v2, %v2180_v5  ;;  %v591_v12 = vmul.f32 %v568_v2, %v2204_v41  ;;  %v592_v9 = vmul.f32 %v568_v2, %v2265_v4  ;;  %v593_v3 = vmul.f32 %v568_v2, %v2286_v49  ;;  %v640_v30 = vpop.permute.xlu2 %639 }
 0x18d   :  { %v662_v58 = vmul.f32 %v640_v30, %v2420_v44  ;;  %v663_v61 = vmul.f32 %v640_v30, %v2478_v42  ;;  %v664_v24 = vmul.f32 %v640_v30, %v2490_v36  ;;  %v665_v28 = vmul.f32 %v640_v30, %v2494_v52 }
 0x18e   :  { %v614_v53 = vadd.f32 %v590_v6, %v542_v26  ;;  %v615_v55 = vadd.f32 %v591_v12, %v543_v63  ;;  %v616_v43 = vadd.f32 %v592_v9, %v544_v27  ;;  %v2562_v1 = vpop.permute.xlu0 %691  ;;  %v617_v5 = vadd.f32 %v593_v3, %v545_v14 }
 0x18f   :  { %v2577_v26 = vsel %vm368_vm9, %v2298_v22, %v2312_v25  ;;  %v2583_v63 = vsel %vm368_vm9, %v2312_v25, %v2222_v60 }
 0x190   :  { %1769 = vset.pattern.permute.xlu2 %v3968_v0  ;;  %v2565_v4 = vadd.f32 %v665_v28, %v617_v5  ;;  %v2567_v2 = vadd.f32 %v663_v61, %v615_v55  ;;  %v2569_v49 = vadd.f32 %v664_v24, %v616_v43  ;;  %v2571_v44 = vadd.f32 %v662_v58, %v614_v53 }
 0x191   :  { %3982 = vst [vmem:[#allocation77_spill] sm:$0xff] %v2577_v26  ;;  %1772 = vset.pattern.permute.xlu1 %v3959_v19  ;;  %943 = vperm.xlu2 %1769, %v1882_v8   ;;  %v578_v5 = vmul.f32 %v2486_v50, %v1993_v47  ;;  %v581_v53 = vmul.f32 %v2486_v50, %v2101_v51 }
 0x192   :  { %3978 = vst [vmem:[#allocation73_spill] sm:$0xff] %v2565_v4  ;;  %899 = vperm.xlu1 %1772, %v1874_v7   ;;  %v2596_v61 = vsel %vm473_vm10, %v2258_v48, %v2282_v18  ;;  %v530_v25 = vmul.f32 %v2155_v34, %v2583_v63  ;;  %v533_v43 = vmul.f32 %v2155_v34, %v2577_v26 }
 0x193   :  { %3979 = vst [vmem:[#allocation74_spill] sm:$0xff] %v2567_v2  ;;  %v2606_v0 = vsel %vm473_vm10, %v2341_v23, %v2258_v48  ;;  %v2630_v55 = vsel %vm368_vm9, %v2222_v60, %v2241_v62  ;;  %v643_v2 = vmul.f32 %v2365_v35, %v2347_v37 }
 0x194   :  { %3980 = vst [vmem:[#allocation75_spill] sm:$0xff] %v2569_v49  ;;  %v2608_v58 = vpop.permute.xlu1 %627  ;;  %v602_v14 = vadd.f32 %v578_v5, %v530_v25  ;;  %v605_v12 = vadd.f32 %v581_v53, %v533_v43  ;;  %v523_v5 = vmul.f32 %v2185_v17, %v2271_v57  ;;  %v2638_v53 = vsel %vm368_vm9, %v2241_v62, %v2298_v22 }
 0x195   :  { %3981 = vst [vmem:[#allocation76_spill] sm:$0xff] %v2571_v44  ;;  %v650_v24 = vmul.f32 %v2608_v58, %v2596_v61  ;;  %v653_v28 = vmul.f32 %v2608_v58, %v2606_v0  ;;  %v700_v27 = vpop.permute.xlu2 %699  ;;  %v2652_v62 = vsel %vm368_vm9, %v2260_v56, %v2284_v33  ;;  %v571_v22 = vmul.f32 %v2237_v20, %v1970_v32 }
 0x196   :  { %3983 = vst [vmem:[#allocation78_spill] sm:$0xff] %v2583_v63  ;;  %v2614_v6 = vpop.permute.xlu0 %711  ;;  %v723_v25 = vmul.f32 %v700_v27, %v2630_v55  ;;  %v724_v43 = vmul.f32 %v700_v27, %v2638_v53 }
 0x197   :  { %v677_v9 = vadd.f32 %v653_v28, %v605_v12  ;;  %v2616_v3 = vadd.f32 %v650_v24, %v602_v14  ;;  %v725_v24 = vmul.f32 %v700_v27, %v2577_v26  ;;  %3986 = vst [vmem:[#allocation81_spill] sm:$0xff] %v2652_v62 }
 0x199   :  { %3984 = vst [vmem:[#allocation79_spill] sm:$0xff] %v2616_v3  ;;  %947 = vperm.xlu2 %1769, %v1874_v7   ;;  %1114 = vrot.lane.b32.xlu0 %v677_v9, %s1814_s7  ;;  %v595_v3 = vadd.f32 %v571_v22, %v523_v5  ;;  %v2691_v5 = vsel %vm368_vm9, %v2343_v59, %v2260_v56  ;;  %v3990_v22 = vld [vmem:[#allocation5_spill] sm:$0xff]  ;;  %v3991_v59 = vld [vmem:[#allocation38_spill] sm:$0xff] }
 0x19a   :  { %1773 = vset.pattern.permute.xlu1 %v3975_v11  ;;  %3988 = vst [vmem:[#allocation83_spill] sm:$0xff] %v2691_v5 }
 0x19b   :  { %1015 = vperm.xlu1 %1773, %v1882_v8   ;;  %v722_v8 = vmul.f32 %v700_v27, %v2583_v63  ;;  %v3994_v63 = vld [vmem:[#allocation69_spill] sm:$0xff] }
 0x19c   :  { %v2622_v48 = vpop.permute.xlu1 %635 }
 0x19d   :  { %3985 = vst [vmem:[#allocation80_spill] sm:$0xff] %v2622_v48  ;;  %v2624_v30 = vpop.permute.xlu2 %707  ;;  %v667_v48 = vadd.f32 %v643_v2, %v595_v3  ;;  %v2728_v3 = vld [vmem:[%s3758_s1 + $0x28] sm:$0xff] }
 0x19e   :  { %3996 = vst [vmem:[#allocation85_spill] sm:$0xff] %v2728_v3 }
 0x19f   :  { %v748_v28 = vpop.permute.xlu0 %747 }
 0x1a0   :  { %v770_v60 = vmul.f32 %v748_v28, %v1993_v47  ;;  %v771_v14 = vmul.f32 %v748_v28, %v2010_v54  ;;  %v772_v12 = vmul.f32 %v748_v28, %v2082_v39  ;;  %v773_v9 = vmul.f32 %v748_v28, %v2101_v51 }
 0x1a1   :  { %1774 = vset.pattern.permute.xlu2 %v3959_v19  ;;  %v576_v19 = vmul.f32 %v2199_v31, %v2058_v21 }
 0x1a2   :  { %903 = vperm.xlu2 %1774, %v1900_v10   ;;  %v2658_v27 = vadd.f32 %v773_v9, %v725_v24  ;;  %v2660_v44 = vadd.f32 %v772_v12, %v724_v43  ;;  %v2662_v49 = vadd.f32 %v770_v60, %v722_v8  ;;  %v2664_v28 = vadd.f32 %v771_v14, %v723_v25  ;;  %v3989_v14 = vld [vmem:[#allocation65_spill] sm:$0xff] }
 0x1a3   :  { %1019 = vperm.xlu1 %1773, %v1874_v7   ;;  %v575_v10 = vmul.f32 %v2199_v31, %v1991_v45  ;;  %v527_v43 = vmul.f32 %v2183_v16, %v2652_v62  ;;  %v2679_v8 = vsel %vm473_vm10, %v2300_v40, %v2314_v46  ;;  %v2685_v7 = vsel %vm368_vm9, %v2284_v33, %v2327_v29 }
 0x1a4   :  { %3987 = vst [vmem:[#allocation82_spill] sm:$0xff] %v2679_v8  ;;  %v528_v56 = vmul.f32 %v2183_v16, %v2685_v7 }
 0x1a5   :  { %v696_v25 = vpop.permute.xlu1 %695 }
 0x1a6   :  { %v718_v24 = vmul.f32 %v696_v25, %v2691_v5  ;;  %v719_v60 = vmul.f32 %v696_v25, %v2652_v62  ;;  %v720_v40 = vmul.f32 %v696_v25, %v2685_v7  ;;  %v721_v12 = vmul.f32 %v696_v25, %v3989_v14  ;;  %v744_v9 = vpop.permute.xlu2 %743 }
 0x1a7   :  { %v766_v4 = vmul.f32 %v744_v9, %v3990_v22  ;;  %v767_v33 = vmul.f32 %v744_v9, %v1991_v45  ;;  %v768_v29 = vmul.f32 %v744_v9, %v2058_v21  ;;  %v769_v31 = vmul.f32 %v744_v9, %v2080_v38  ;;  %v3995_v21 = vld [vmem:[#allocation70_spill] sm:$0xff] }
 0x1a8   :  { %v2707_v62 = vsel %vm473_vm10, %v2314_v46, %v3991_v59  ;;  %v2713_v25 = vsel %vm473_vm10, %v3991_v59, %v2363_v13  ;;  %v816_v45 = vpop.permute.xlu0 %815  ;;  %v532_v14 = vmul.f32 %v2155_v34, %v2638_v53 }
 0x1a9   :  { %3992 = vst [vmem:[#allocation38_spill] sm:$0xff] %v2707_v62  ;;  %v838_v26 = vmul.f32 %v816_v45, %v2679_v8  ;;  %v839_v9 = vmul.f32 %v816_v45, %v2707_v62  ;;  %v840_v16 = vmul.f32 %v816_v45, %v2713_v25  ;;  %v841_v51 = vmul.f32 %v816_v45, %v3994_v63 }
 0x1aa   :  { %3993 = vst [vmem:[#allocation84_spill] sm:$0xff] %v2713_v25  ;;  %1775 = vset.pattern.permute.xlu2 %v3975_v11  ;;  %v792_v46 = vadd.f32 %v768_v29, %v720_v40  ;;  %v793_v47 = vadd.f32 %v769_v31, %v721_v12  ;;  %v790_v22 = vadd.f32 %v766_v4, %v718_v24  ;;  %v4002_v40 = vld [vmem:[#allocation44_spill] sm:$0xff]  ;;  %v4003_v12 = vld [vmem:[#allocation43_spill] sm:$0xff] }
 0x1ab   :  { %v791_v38 = vadd.f32 %v767_v33, %v719_v60  ;;  %v647_v13 = vmul.f32 %v3995_v21, %v2707_v62  ;;  %v648_v2 = vmul.f32 %v3995_v21, %v2713_v25  ;;  %1086 = vrot.lane.b32.xlu1 %v667_v48, %s1814_s7  ;;  %1023 = vperm.xlu2 %1775, %v2728_v3   ;;  %v4001_v60 = vld [vmem:[#allocation34_spill] sm:$0xff] }
 0x1ac   :  { %v599_v45 = vadd.f32 %v575_v10, %v527_v43  ;;  %v2731_v11 = vadd.f32 %v840_v16, %v792_v46  ;;  %v2733_v31 = vadd.f32 %v841_v51, %v793_v47  ;;  %v2735_v4 = vadd.f32 %v838_v26, %v790_v22  ;;  %v4005_v16 = vld [vmem:[#allocation57_spill] sm:$0xff]  ;;  %v4007_v10 = vld [vmem:[#allocation54_spill] sm:$0xff] }
 0x1ad   :  { %v2737_v24 = vadd.f32 %v839_v9, %v791_v38  ;;  %v2743_v48 = vsel %vm473_vm10, %v2282_v18, %v4001_v60  ;;  %v2749_v33 = vsel %vm368_vm9, %v4003_v12, %v4002_v40  ;;  %v2755_v47 = vsel %vm368_vm9, %v4005_v16, %v4003_v12  ;;  %v2757_v38 = vpop.permute.xlu1 %703  ;;  %v4008_v22 = vld [vmem:[#allocation58_spill] sm:$0xff]  ;;  %v4009_v9 = vld [vmem:[#allocation17_spill] sm:$0xff]  ;;  %v4011_v16 = vld [vmem:[#allocation28_spill] sm:$0xff] }
 0x1ae   :  { %3997 = vst [vmem:[#allocation86_spill] sm:$0xff] %v2731_v11  ;;  %v600_v51 = vadd.f32 %v576_v19, %v528_v56  ;;  %v730_v26 = vmul.f32 %v2624_v30, %v2755_v47  ;;  %v731_v18 = vmul.f32 %v2624_v30, %v2749_v33  ;;  %v732_v43 = vmul.f32 %v2624_v30, %v4007_v10  ;;  %v756_v59 = vpop.permute.xlu2 %755  ;;  %v4010_v40 = vld [vmem:[#allocation18_spill] sm:$0xff]  ;;  %v4019_v10 = vld [vmem:[#allocation9_spill] sm:$0xff] }
 0x1af   :  { %3998 = vst [vmem:[#allocation87_spill] sm:$0xff] %v2733_v31  ;;  %v733_v29 = vmul.f32 %v2624_v30, %v4008_v22  ;;  %v778_v46 = vmul.f32 %v756_v59, %v4009_v9  ;;  %v779_v12 = vmul.f32 %v756_v59, %v4010_v40  ;;  %v4012_v19 = vld [vmem:[#allocation30_spill] sm:$0xff]  ;;  %v671_v31 = vadd.f32 %v647_v13, %v599_v45  ;;  %v4014_v13 = vld [vmem:[#allocation12_spill] sm:$0xff] }
 0x1b0   :  { %3999 = vst [vmem:[#allocation88_spill] sm:$0xff] %v2735_v4  ;;  %v781_v56 = vmul.f32 %v756_v59, %v4012_v19  ;;  %v4013_v4 = vld [vmem:[#allocation35_spill] sm:$0xff]  ;;  %v672_v62 = vadd.f32 %v648_v2, %v600_v51  ;;  %v651_v19 = vmul.f32 %v2608_v58, %v2743_v48  ;;  %v573_v2 = vmul.f32 %v2237_v20, %v4014_v13  ;;  %v4015_v51 = vld [vmem:[#allocation36_spill] sm:$0xff]  ;;  %v4020_v20 = vld [vmem:[#allocation33_spill] sm:$0xff] }
 0x1b1   :  { %4000 = vst [vmem:[#allocation89_spill] sm:$0xff] %v2737_v24  ;;  %v780_v24 = vmul.f32 %v756_v59, %v4011_v16  ;;  %v525_v3 = vmul.f32 %v2185_v17, %v4013_v4  ;;  %v2775_v11 = vpop.permute.xlu0 %883  ;;  %v2781_v9 = vadd.f32 %v778_v46, %v730_v26  ;;  %v2783_v21 = vadd.f32 %v779_v12, %v731_v18  ;;  %v4021_v17 = vld [vmem:[#allocation47_spill] sm:$0xff] }
 0x1b2   :  { %4004 = vst [vmem:[#allocation34_spill] sm:$0xff] %v2749_v33  ;;  %v2779_v22 = vadd.f32 %v781_v56, %v733_v29  ;;  %v531_v59 = vmul.f32 %v2155_v34, %v2630_v55  ;;  %v714_v26 = vmul.f32 %v2562_v1, %v4015_v51  ;;  %v715_v46 = vmul.f32 %v2562_v1, %v2271_v57 }
 0x1b3   :  { %4006 = vst [vmem:[#allocation44_spill] sm:$0xff] %v2755_v47  ;;  %v579_v47 = vmul.f32 %v2486_v50, %v2010_v54  ;;  %v2777_v30 = vadd.f32 %v780_v24, %v732_v43  ;;  %1100 = vrot.lane.b32.xlu1 %v672_v62, %s1814_s7  ;;  %1088 = vrot.lane.b32.xlu2 %v671_v31, %s1814_s7  ;;  %v4016_v43 = vld [vmem:[#allocation39_spill] sm:$0xff]  ;;  %v4017_v62 = vld [vmem:[#allocation46_spill] sm:$0xff] }
 0x1b4   :  { %v580_v24 = vmul.f32 %v2486_v50, %v2082_v39  ;;  %v597_v18 = vadd.f32 %v573_v2, %v525_v3  ;;  %v645_v29 = vmul.f32 %v2365_v35, %v4016_v43  ;;  %v716_v31 = vmul.f32 %v2562_v1, %v4017_v62 }
 0x1b5   :  { %v603_v45 = vadd.f32 %v579_v47, %v531_v59  ;;  %v717_v12 = vmul.f32 %v2562_v1, %v4013_v4  ;;  %v4018_v59 = vld [vmem:[#allocation4_spill] sm:$0xff] }
 0x1b6   :  { %v740_v47 = vpop.permute.xlu1 %739  ;;  %v669_v5 = vadd.f32 %v645_v29, %v597_v18  ;;  %v4027_v18 = vld [vmem:[#allocation52_spill] sm:$0xff] }
 0x1b7   :  { %v675_v56 = vadd.f32 %v651_v19, %v603_v45  ;;  %v762_v50 = vmul.f32 %v740_v47, %v4018_v59  ;;  %v763_v16 = vmul.f32 %v740_v47, %v1970_v32  ;;  %v764_v3 = vmul.f32 %v740_v47, %v4019_v10  ;;  %v812_v35 = vpop.permute.xlu2 %811 }
 0x1b8   :  { %v765_v2 = vmul.f32 %v740_v47, %v4014_v13  ;;  %v834_v40 = vmul.f32 %v812_v35, %v4020_v20  ;;  %v835_v33 = vmul.f32 %v812_v35, %v2347_v37  ;;  %v836_v63 = vmul.f32 %v812_v35, %v4021_v17 }
 0x1b9   :  { %v837_v25 = vmul.f32 %v812_v35, %v4016_v43  ;;  %v788_v4 = vadd.f32 %v764_v3, %v716_v31  ;;  %v786_v19 = vadd.f32 %v762_v50, %v714_v26  ;;  %v787_v45 = vadd.f32 %v763_v16, %v715_v46  ;;  %v4028_v46 = vld [vmem:[#allocation42_spill] sm:$0xff]  ;;  %v4033_v3 = vld [vmem:[#allocation20_spill] sm:$0xff] }
 0x1ba   :  { %v789_v1 = vadd.f32 %v765_v2, %v717_v12  ;;  %v2813_v8 = vpop.permute.xlu0 %1011  ;;  %v2821_v47 = vsel %vm473_vm10, %v4001_v60, %v2341_v23  ;;  %v604_v60 = vadd.f32 %v580_v24, %v532_v14  ;;  %v726_v29 = vmul.f32 %v2757_v38, %v4027_v18  ;;  %v4029_v12 = vld [vmem:[#allocation48_spill] sm:$0xff]  ;;  %v4034_v14 = vld [vmem:[#allocation25_spill] sm:$0xff] }
 0x1bb   :  { %v2825_v13 = vmul.f32 %v2813_v8, %v2743_v48  ;;  %1090 = vrot.lane.b32.xlu1 %v675_v56, %s1814_s7  ;;  %1110 = vrot.lane.b32.xlu2 %v669_v5, %s1814_s7  ;;  %v2831_v16 = vadd.f32 %v836_v63, %v788_v4  ;;  %v2833_v26 = vadd.f32 %v834_v40, %v786_v19  ;;  %v4031_v40 = vld [vmem:[#allocation15_spill] sm:$0xff]  ;;  %v4032_v56 = vld [vmem:[#allocation16_spill] sm:$0xff] }
 0x1bc   :  { %v2829_v35 = vadd.f32 %v837_v25, %v789_v1  ;;  %v2835_v34 = vadd.f32 %v835_v33, %v787_v45  ;;  %v652_v23 = vmul.f32 %v2608_v58, %v2821_v47  ;;  %v727_v31 = vmul.f32 %v2757_v38, %v4028_v46  ;;  %v4030_v25 = vld [vmem:[#allocation51_spill] sm:$0xff]  ;;  %v4035_v1 = vld [vmem:[#allocation45_spill] sm:$0xff]  ;;  %v4038_v18 = vld [vmem:[#allocation60_spill] sm:$0xff] }
 0x1bd   :  { %4022 = vst [vmem:[#allocation43_spill] sm:$0xff] %v2825_v13  ;;  %v728_v5 = vmul.f32 %v2757_v38, %v4029_v12  ;;  %v729_v63 = vmul.f32 %v2757_v38, %v4030_v25  ;;  %v4036_v45 = vld [vmem:[#allocation55_spill] sm:$0xff] }
 0x1be   :  { %4023 = vst [vmem:[#allocation57_spill] sm:$0xff] %v2829_v35  ;;  %v752_v4 = vpop.permute.xlu1 %751 }
 0x1bf   :  { %4024 = vst [vmem:[#allocation36_spill] sm:$0xff] %v2831_v16  ;;  %v774_v33 = vmul.f32 %v752_v4, %v4031_v40  ;;  %v775_v50 = vmul.f32 %v752_v4, %v4032_v56  ;;  %v776_v58 = vmul.f32 %v752_v4, %v4033_v3  ;;  %v777_v24 = vmul.f32 %v752_v4, %v4034_v14  ;;  %v824_v2 = vpop.permute.xlu2 %823  ;;  %v4044_v14 = vld [vmem:[#allocation71_spill] sm:$0xff] }
 0x1c0   :  { %4025 = vst [vmem:[#allocation46_spill] sm:$0xff] %v2833_v26  ;;  %v846_v19 = vmul.f32 %v824_v2, %v4035_v1  ;;  %v4037_v26 = vld [vmem:[#allocation59_spill] sm:$0xff]  ;;  %v849_v35 = vmul.f32 %v824_v2, %v4038_v18  ;;  %v676_v40 = vadd.f32 %v652_v23, %v604_v60  ;;  %v4043_v1 = vld [vmem:[#allocation72_spill] sm:$0xff] }
 0x1c1   :  { %4026 = vst [vmem:[#allocation4_spill] sm:$0xff] %v2835_v34  ;;  %v847_v34 = vmul.f32 %v824_v2, %v4036_v45  ;;  %v848_v16 = vmul.f32 %v824_v2, %v4037_v26  ;;  %v800_v15 = vadd.f32 %v776_v58, %v728_v5  ;;  %v801_v38 = vadd.f32 %v777_v24, %v729_v63  ;;  %v4045_v63 = vld [vmem:[#allocation53_spill] sm:$0xff]  ;;  %v4046_v23 = vld [vmem:[#allocation56_spill] sm:$0xff] }
 0x1c2   :  { %v798_v12 = vadd.f32 %v774_v33, %v726_v29  ;;  %v799_v43 = vadd.f32 %v775_v50, %v727_v31  ;;  %v734_v26 = vmul.f32 %v2614_v6, %v4043_v1  ;;  %v735_v5 = vmul.f32 %v2614_v6, %v4044_v14  ;;  %v4050_v50 = vld [vmem:[#allocation49_spill] sm:$0xff] }
 0x1c3   :  { %v2855_v25 = vadd.f32 %v848_v16, %v800_v15  ;;  %v2857_v13 = vadd.f32 %v849_v35, %v801_v38  ;;  %1102 = vrot.lane.b32.xlu2 %v676_v40, %s1814_s7  ;;  %v736_v29 = vmul.f32 %v2614_v6, %v4045_v63  ;;  %v737_v15 = vmul.f32 %v2614_v6, %v4046_v23  ;;  %v4047_v16 = vld [vmem:[#allocation21_spill] sm:$0xff] }
 0x1c4   :  { %v2859_v3 = vadd.f32 %v846_v19, %v798_v12  ;;  %v2861_v4 = vadd.f32 %v847_v34, %v799_v43  ;;  %v4048_v34 = vld [vmem:[#allocation31_spill] sm:$0xff]  ;;  %v4049_v12 = vld [vmem:[#allocation32_spill] sm:$0xff] }
 0x1c5   :  { %4039 = vst [vmem:[#allocation9_spill] sm:$0xff] %v2855_v25 }
 0x1c6   :  { %4040 = vst [vmem:[#allocation33_spill] sm:$0xff] %v2857_v13  ;;  %v760_v35 = vpop.permute.xlu1 %759 }
 0x1c7   :  { %4041 = vst [vmem:[#allocation47_spill] sm:$0xff] %v2859_v3  ;;  %v782_v60 = vmul.f32 %v760_v35, %v4047_v16  ;;  %v783_v43 = vmul.f32 %v760_v35, %v2204_v41  ;;  %v784_v31 = vmul.f32 %v760_v35, %v4048_v34  ;;  %v785_v40 = vmul.f32 %v760_v35, %v4049_v12  ;;  %v832_v33 = vpop.permute.xlu2 %831  ;;  %v4086_v34 = vld [vmem:[#allocation78_spill] sm:$0xff] }
 0x1c8   :  { %4042 = vst [vmem:[#allocation42_spill] sm:$0xff] %v2861_v4  ;;  %v854_v58 = vmul.f32 %v832_v33, %v4050_v50  ;;  %v855_v24 = vmul.f32 %v832_v33, %v2478_v42  ;;  %v856_v2 = vmul.f32 %v832_v33, %v2490_v36  ;;  %v857_v19 = vmul.f32 %v832_v33, %v2494_v52 }
 0x1c9   :  { %v809_v38 = vadd.f32 %v785_v40, %v737_v15  ;;  %v808_v6 = vadd.f32 %v784_v31, %v736_v29  ;;  %v806_v4 = vadd.f32 %v782_v60, %v734_v26  ;;  %v807_v3 = vadd.f32 %v783_v43, %v735_v5  ;;  %v4058_v31 = vld [vmem:[#allocation62_spill] sm:$0xff] }
 0x1cb   :  { %v2880_v13 = vadd.f32 %v857_v19, %v809_v38  ;;  %v2882_v25 = vadd.f32 %v856_v2, %v808_v6  ;;  %v2884_v41 = vadd.f32 %v854_v58, %v806_v4  ;;  %v2886_v35 = vadd.f32 %v855_v24, %v807_v3  ;;  %v4060_v58 = vld [vmem:[#allocation67_spill] sm:$0xff] }
 0x1cd   :  { %4051 = vst [vmem:[#allocation16_spill] sm:$0xff] %v2880_v13  ;;  %v4074_v13 = vld [vmem:[#allocation27_spill] sm:$0xff] }
 0x1ce   :  { %4052 = vst [vmem:[#allocation55_spill] sm:$0xff] %v2882_v25 }
 0x1cf   :  { %4053 = vst [vmem:[#allocation60_spill] sm:$0xff] %v2884_v41  ;;  %v820_v14 = vpop.permute.xlu1 %819 }
 0x1d0   :  { %4054 = vst [vmem:[#allocation72_spill] sm:$0xff] %v2886_v35  ;;  %v842_v12 = vmul.f32 %v820_v14, %v2596_v61  ;;  %v843_v42 = vmul.f32 %v820_v14, %v2743_v48  ;;  %v844_v23 = vmul.f32 %v820_v14, %v2821_v47  ;;  %v845_v15 = vmul.f32 %v820_v14, %v2606_v0  ;;  %v2892_v29 = vpop.permute.xlu2 %891  ;;  %v4057_v48 = vld [vmem:[#allocation50_spill] sm:$0xff]  ;;  %v4073_v35 = vld [vmem:[#allocation69_spill] sm:$0xff] }
 0x1d1   :  { %v4059_v14 = vld [vmem:[#allocation66_spill] sm:$0xff] }
 0x1d2   :  { %v2895_v26 = vadd.f32 %v845_v15, %v2658_v27  ;;  %v2898_v5 = vadd.f32 %v844_v23, %v2660_v44  ;;  %v2901_v3 = vadd.f32 %v842_v12, %v2662_v49  ;;  %v2904_v4 = vadd.f32 %v843_v42, %v2664_v28 }
 0x1d3   :  { %v907_v44 = vmul.f32 %v2775_v11, %v2271_v57 }
 0x1d4   :  { %4055 = vst [vmem:[#allocation53_spill] sm:$0xff] %v2901_v3  ;;  %v4085_v3 = vld [vmem:[#allocation14_spill] sm:$0xff] }
 0x1d5   :  { %4056 = vst [vmem:[#allocation90_spill] sm:$0xff] %v2904_v4 }
 0x1d8   :  { %v828_v60 = vpop.permute.xlu1 %827 }
 0x1d9   :  { %v850_v43 = vmul.f32 %v828_v60, %v4057_v48  ;;  %v851_v40 = vmul.f32 %v828_v60, %v4058_v31  ;;  %v852_v33 = vmul.f32 %v828_v60, %v4059_v14  ;;  %v853_v24 = vmul.f32 %v828_v60, %v4060_v58  ;;  %v2910_v27 = vpop.permute.xlu2 %931 }
 0x1da   :  { %v955_v49 = vmul.f32 %v2910_v27, %v1970_v32  ;;  %v956_v19 = vmul.f32 %v2910_v27, %v4019_v10  ;;  %v954_v57 = vmul.f32 %v2910_v27, %v4018_v59  ;;  %v908_v32 = vmul.f32 %v2775_v11, %v4017_v62 }
 0x1db   :  { %v2917_v42 = vadd.f32 %v852_v33, %v2777_v30  ;;  %v2920_v28 = vadd.f32 %v853_v24, %v2779_v22  ;;  %v2923_v23 = vadd.f32 %v850_v43, %v2781_v9  ;;  %v2926_v12 = vadd.f32 %v851_v40, %v2783_v21 }
 0x1dc   :  { %v979_v2 = vadd.f32 %v955_v49, %v907_v44  ;;  %v906_v22 = vmul.f32 %v2775_v11, %v4015_v51  ;;  %v980_v38 = vadd.f32 %v956_v19, %v908_v32  ;;  %v915_v49 = vmul.f32 %v2892_v29, %v2630_v55  ;;  %v4065_v55 = vld [vmem:[#allocation65_spill] sm:$0xff] }
 0x1dd   :  { %4061 = vst [vmem:[#allocation50_spill] sm:$0xff] %v2917_v42  ;;  %v4084_v42 = vld [vmem:[#allocation7_spill] sm:$0xff] }
 0x1de   :  { %4062 = vst [vmem:[#allocation66_spill] sm:$0xff] %v2920_v28  ;;  %v978_v10 = vadd.f32 %v954_v57, %v906_v22  ;;  %v1036_v22 = vmul.f32 %v2813_v8, %v2821_v47  ;;  %v535_v28 = vmul.f32 %v4074_v13, %v4028_v46 }
 0x1df   :  { %4063 = vst [vmem:[#allocation67_spill] sm:$0xff] %v2923_v23 }
 0x1e0   :  { %4064 = vst [vmem:[#allocation91_spill] sm:$0xff] %v2926_v12 }
 0x1e1   :  { %v2936_v30 = vpop.permute.xlu1 %887 }
 0x1e2   :  { %v1004_v9 = vpop.permute.xlu2 %1003 }
 0x1e3   :  { %v1026_v21 = vmul.f32 %v1004_v9, %v4020_v20  ;;  %v1027_v6 = vmul.f32 %v1004_v9, %v2347_v37  ;;  %v1028_v15 = vmul.f32 %v1004_v9, %v4021_v17 }
 0x1e5   :  { %v1052_v60 = vadd.f32 %v1028_v15, %v980_v38  ;;  %v1050_v43 = vadd.f32 %v1026_v21, %v978_v10  ;;  %v2941_v40 = vadd.f32 %v1027_v6, %v979_v2  ;;  %v916_v2 = vmul.f32 %v2892_v29, %v2638_v53  ;;  %v2965_v6 = vpop.permute.xlu0 %935 }
 0x1e6   :  { %v912_v15 = vmul.f32 %v2936_v30, %v2685_v7  ;;  %v913_v10 = vmul.f32 %v2936_v30, %v4065_v55  ;;  %v4072_v55 = vld [vmem:[#allocation84_spill] sm:$0xff] }
 0x1e7   :  { %1227 = vrot.lane.b32.xlu0 %v1052_v60, %s1815_s10  ;;  %1203 = vrot.lane.b32.xlu1 %v1050_v43, %s1815_s10 }
 0x1e9   :  { %v2945_v62 = vpop.permute.xlu1 %895 }
 0x1ea   :  { %v919_v24 = vmul.f32 %v2945_v62, %v4028_v46 }
 0x1eb   :  { %v2947_v33 = vpop.permute.xlu2 %943 }
 0x1ec   :  { %v967_v17 = vmul.f32 %v2947_v33, %v4032_v56 }
 0x1ee   :  { %v2953_v37 = vadd.f32 %v967_v17, %v919_v24  ;;  %v4068_v24 = vld [vmem:[#allocation11_spill] sm:$0xff]  ;;  %v4069_v17 = vld [vmem:[#allocation13_spill] sm:$0xff] }
 0x1ef   :  { %v960_v47 = vmul.f32 %v2965_v6, %v4068_v24 }
 0x1f2   :  { %v940_v44 = vpop.permute.xlu1 %939 }
 0x1f3   :  { %v963_v19 = vmul.f32 %v940_v44, %v2010_v54  ;;  %v964_v57 = vmul.f32 %v940_v44, %v2082_v39  ;;  %v2961_v32 = vpop.permute.xlu2 %947  ;;  %v4066_v54 = vld [vmem:[#allocation43_spill] sm:$0xff]  ;;  %v962_v4 = vmul.f32 %v940_v44, %v4084_v42  ;;  %v965_v52 = vmul.f32 %v940_v44, %v4085_v3 }
 0x1f4   :  { %v4067_v39 = vld [vmem:[#allocation83_spill] sm:$0xff]  ;;  %v1816_v42 = vmov 20  }
 0x1f5   :  { %v988_v38 = vadd.f32 %v964_v57, %v916_v2  ;;  %v987_v21 = vadd.f32 %v963_v19, %v915_v49  ;;  %v910_v43 = vmul.f32 %v2936_v30, %v4067_v39  ;;  %v961_v49 = vmul.f32 %v2965_v6, %v4069_v17  ;;  %v4070_v2 = vld [vmem:[#allocation5_spill] sm:$0xff]  ;;  %1776 = vset.pattern.permute.xlu0 %v1816_v42 }
 0x1f6   :  { %v958_v7 = vmul.f32 %v2965_v6, %v4070_v2  ;;  %1777 = vset.pattern.permute.xlu1 %v1816_v42  ;;  %v4098_v42 = vld [vmem:[#allocation37_spill] sm:$0xff] }
 0x1f7   :  { %v2971_v53 = vadd.f32 %v1036_v22, %v988_v38  ;;  %v2974_v60 = vadd.f32 %v4066_v54, %v987_v21  ;;  %v985_v57 = vadd.f32 %v961_v49, %v913_v10  ;;  %v984_v22 = vadd.f32 %v960_v47, %v912_v15  ;;  %v4071_v38 = vld [vmem:[#allocation82_spill] sm:$0xff]  ;;  %v4075_v10 = vld [vmem:[#allocation51_spill] sm:$0xff]  ;;  %v4076_v47 = vld [vmem:[#allocation41_spill] sm:$0xff] }
 0x1f8   :  { %v982_v12 = vadd.f32 %v958_v7, %v910_v43  ;;  %v537_v15 = vmul.f32 %v4074_v13, %v4075_v10  ;;  %v583_v49 = vmul.f32 %v4076_v47, %v4032_v56  ;;  %v4079_v43 = vld [vmem:[#allocation25_spill] sm:$0xff]  ;;  %v3014_v56 = vpop.permute.xlu0 %951 }
 0x1f9   :  { %v585_v7 = vmul.f32 %v4076_v47, %v4079_v43  ;;  %4082 = vst [vmem:[#allocation65_spill] sm:$0xff] %v3014_v56 }
 0x1fb   :  { %v2984_v19 = vpop.permute.xlu1 %1007 }
 0x1fc   :  { %v1030_v21 = vmul.f32 %v2984_v19, %v4071_v38  ;;  %v1032_v54 = vmul.f32 %v2984_v19, %v4072_v55  ;;  %v1033_v41 = vmul.f32 %v2984_v19, %v4073_v35  ;;  %v2992_v24 = vpop.permute.xlu2 %903  ;;  %v4077_v35 = vld [vmem:[#allocation12_spill] sm:$0xff] }
 0x1fd   :  { %v957_v55 = vmul.f32 %v2910_v27, %v4077_v35  ;;  %v609_v27 = vadd.f32 %v585_v7, %v537_v15 }
 0x1fe   :  { %v1057_v17 = vadd.f32 %v1033_v41, %v985_v57  ;;  %v1056_v23 = vadd.f32 %v1032_v54, %v984_v22  ;;  %v1054_v25 = vadd.f32 %v1030_v21, %v982_v12  ;;  %v4078_v41 = vld [vmem:[#allocation68_spill] sm:$0xff]  ;;  %v4080_v57 = vld [vmem:[#allocation35_spill] sm:$0xff] }
 0x1ff   :  { %v655_v12 = vmul.f32 %v4078_v41, %v4036_v45  ;;  %v657_v46 = vmul.f32 %v4078_v41, %v4038_v18  ;;  %v4081_v22 = vld [vmem:[#allocation39_spill] sm:$0xff] }
 0x200   :  { %1241 = vrot.lane.b32.xlu0 %v1057_v17, %s1815_s10  ;;  %1229 = vrot.lane.b32.xlu1 %v1056_v23, %s1815_s10  ;;  %v909_v23 = vmul.f32 %v2775_v11, %v4080_v57  ;;  %v1029_v21 = vmul.f32 %v1004_v9, %v4081_v22  ;;  %v914_v11 = vmul.f32 %v2892_v29, %v4086_v34  ;;  %v4087_v9 = vld [vmem:[#allocation77_spill] sm:$0xff]  ;;  %v1099_v7 = vpop.permute.xlu0 %1098 }
 0x201   :  { %1205 = vrot.lane.b32.xlu2 %v1054_v25, %s1815_s10  ;;  %v607_v25 = vadd.f32 %v583_v49, %v535_v28  ;;  %v681_v50 = vadd.f32 %v657_v46, %v609_v27  ;;  %v917_v57 = vmul.f32 %v2892_v29, %v4087_v9  ;;  %v4088_v28 = vld [vmem:[#allocation48_spill] sm:$0xff]  ;;  %v4089_v49 = vld [vmem:[#allocation59_spill] sm:$0xff] }
 0x202   :  { %v981_v35 = vadd.f32 %v957_v55, %v909_v23  ;;  %v536_v15 = vmul.f32 %v4074_v13, %v4088_v28  ;;  %v986_v44 = vadd.f32 %v962_v4, %v914_v11  ;;  %v656_v34 = vmul.f32 %v4078_v41, %v4089_v49  ;;  %v4090_v55 = vld [vmem:[#allocation20_spill] sm:$0xff]  ;;  %v4094_v11 = vld [vmem:[#allocation19_spill] sm:$0xff] }
 0x203   :  { %v679_v16 = vadd.f32 %v655_v12, %v607_v25  ;;  %v989_v3 = vadd.f32 %v965_v52, %v917_v57  ;;  %v584_v29 = vmul.f32 %v4076_v47, %v4090_v55  ;;  %v4091_v52 = vld [vmem:[#allocation10_spill] sm:$0xff]  ;;  %v4092_v25 = vld [vmem:[#allocation23_spill] sm:$0xff] }
 0x204   :  { %v3016_v54 = vpop.permute.xlu1 %899  ;;  %v1053_v36 = vadd.f32 %v1029_v21, %v981_v35  ;;  %v267_v4 = vshra.s32 %v4091_v52, 4  ;;  %v4093_v35 = vld [vmem:[#allocation34_spill] sm:$0xff]  ;;  %v4102_v52 = vld [vmem:[#allocation8_spill] sm:$0xff] }
 0x205   :  { %v3018_v17 = vpop.permute.xlu2 %1023  ;;  %v608_v46 = vadd.f32 %v584_v29, %v536_v15  ;;  %v4097_v15 = vld [vmem:[#allocation18_spill] sm:$0xff] }
 0x206   :  { %4083 = vst [vmem:[#allocation43_spill] sm:$0xff] %v3018_v17 }
 0x207   :  { %v680_v27 = vadd.f32 %v656_v34, %v608_v46  ;;  %v4100_v34 = vld [vmem:[#allocation40_spill] sm:$0xff] }
 0x208   :  { %1116 = vrot.lane.b32.xlu0 %v681_v50, %s1814_s7  ;;  %1092 = vrot.lane.b32.xlu1 %v679_v16, %s1814_s7  ;;  %v1034_v50 = vmul.f32 %v2813_v8, %v2596_v61  ;;  %v1037_v16 = vmul.f32 %v2813_v8, %v2606_v0  ;;  %v522_v61 = vmul.f32 %v4092_v25, %v4015_v51  ;;  %v3053_v8 = vand.u32 15, %v267_v4 }
 0x209   :  { %1239 = vrot.lane.b32.xlu2 %v1053_v36, %s1815_s10  ;;  %v539_v0 = vmul.f32 %v4094_v11, %v4093_v35  ;;  %v587_v51 = vmul.f32 %v4098_v42, %v4097_v15  ;;  %v642_v29 = vmul.f32 %v4100_v34, %v4020_v20  ;;  %v266_v4 = vshra.s32 %v4102_v52, 4  ;;  %v4107_v34 = vld [vmem:[#allocation57_spill] sm:$0xff] }
 0x20a   :  { %v1061_v22 = vadd.f32 %v1037_v16, %v989_v3  ;;  %v1058_v21 = vadd.f32 %v1034_v50, %v986_v44  ;;  %v4099_v3 = vld [vmem:[#allocation29_spill] sm:$0xff]  ;;  %v4101_v50 = vld [vmem:[#allocation2_spill] sm:$0xff]  ;;  %vm283_vm12 = vcmp.ge.s32.totalorder %v3053_v8, 1  ;;  %vm287_vm0 = vcmp.le.s32.totalorder %v3053_v8, 14 }
 0x20b   :  { %v570_v44 = vmul.f32 %v4099_v3, %v4018_v59  ;;  %vm1122_vm11 = vcmp.lt.s32.totalorder %v4101_v50, 16  ;;  %v611_v16 = vadd.f32 %v587_v51, %v539_v0  ;;  %v4104_v59 = vld [vmem:[#allocation54_spill] sm:$0xff]  ;;  %v3086_v3 = vand.u32 15, %v266_v4  ;;  %v4111_v4 = vld [vmem:[#allocation28_spill] sm:$0xff] }
 0x20c   :  { %v540_v25 = vmul.f32 %v4094_v11, %v4104_v59  ;;  %vm1251_vm14 = vcmp.lt.s32.totalorder %v4101_v50, 112 }
 0x20d   :  { %v3039_v12 = vpop.permute.xlu1 %1015  ;;  %v3041_v36 = vpop.permute.xlu2 %1088  ;;  %v594_v46 = vadd.f32 %v570_v44, %v522_v61  ;;  %v4105_v61 = vld [vmem:[#allocation15_spill] sm:$0xff]  ;;  %vm282_vm13 = vcmp.ge.s32.totalorder %v3086_v3, 1  ;;  %vm286_vm15 = vcmp.le.s32.totalorder %v3086_v3, 14 }
 0x20e   :  { %v1039_v23 = vmul.f32 %v3039_v12, %v4036_v45  ;;  %v4096_v45 = vld [vmem:[#allocation80_spill] sm:$0xff]  ;;  %v966_v0 = vmul.f32 %v2947_v33, %v4105_v61 }
 0x20f   :  { %v659_v57 = vmul.f32 %v4096_v45, %v4058_v31 }
 0x210   :  { %1243 = vrot.lane.b32.xlu0 %v1061_v22, %s1815_s10  ;;  %1207 = vrot.lane.b32.xlu1 %v1058_v21, %s1815_s10  ;;  %v3056_v9 = vadd.f32 %v1039_v23, %v2953_v37  ;;  %v3071_v23 = vpop.permute.xlu0 %1112 }
 0x211   :  { %1104 = vrot.lane.b32.xlu2 %v680_v27, %s1814_s7  ;;  %v683_v21 = vadd.f32 %v659_v57, %v611_v16  ;;  %v666_v27 = vadd.f32 %v642_v29, %v594_v46  ;;  %v4106_v57 = vld [vmem:[#allocation22_spill] sm:$0xff]  ;;  %v660_v16 = vmul.f32 %v4096_v45, %v4059_v14  ;;  %v4109_v46 = vld [vmem:[#allocation52_spill] sm:$0xff] }
 0x212   :  { %4095 = vst [vmem:[#allocation83_spill] sm:$0xff] %v3056_v9  ;;  %v526_v44 = vmul.f32 %v4106_v57, %v4067_v39  ;;  %v918_v52 = vmul.f32 %v2945_v62, %v4109_v46  ;;  %v4112_v39 = vld [vmem:[#allocation70_spill] sm:$0xff] }
 0x213   :  { %v646_v57 = vmul.f32 %v4112_v39, %v4071_v38 }
 0x215   :  { %v3068_v37 = vpop.permute.xlu1 %1019  ;;  %v3073_v22 = vpop.permute.xlu2 %1110 }
 0x216   :  { %4103 = vst [vmem:[#allocation11_spill] sm:$0xff] %v3073_v22  ;;  %v1123_v20 = vsel %vm1122_vm11, %v1099_v7, %v3073_v22 }
 0x217   :  { %v1158_v51 = vsel %vm283_vm12, %v1123_v20, 0.0  ;;  %v588_v20 = vmul.f32 %v4098_v42, %v4111_v4 }
 0x218   :  { %1094 = vrot.lane.b32.xlu0 %v683_v21, %s1814_s7  ;;  %1074 = vrot.lane.b32.xlu1 %v666_v27, %s1814_s7  ;;  %v3091_v29 = vadd.f32 %v1158_v51, %v4107_v34  ;;  %v4110_v21 = vld [vmem:[#allocation45_spill] sm:$0xff]  ;;  %v4113_v51 = vld [vmem:[#allocation24_spill] sm:$0xff]  ;;  %v3110_v15 = vpop.permute.xlu0 %1114 }
 0x219   :  { %1231 = vrot.lane.b32.xlu2 %v2971_v53, %s1815_s10  ;;  %v1038_v27 = vmul.f32 %v3039_v12, %v4110_v21  ;;  %v574_v34 = vmul.f32 %v4113_v51, %v4070_v2  ;;  %v990_v53 = vadd.f32 %v966_v0, %v918_v52  ;;  %v612_v22 = vadd.f32 %v588_v20, %v540_v25 }
 0x21a   :  { %4108 = vst [vmem:[#allocation13_spill] sm:$0xff] %v3091_v29  ;;  %v968_v0 = vmul.f32 %v2947_v33, %v4090_v55  ;;  %v1040_v55 = vmul.f32 %v3039_v12, %v4089_v49 }
 0x21b   :  { %v598_v31 = vadd.f32 %v574_v34, %v526_v44  ;;  %v1062_v17 = vadd.f32 %v1038_v27, %v990_v53  ;;  %v684_v56 = vadd.f32 %v660_v16, %v612_v22  ;;  %v4114_v44 = vld [vmem:[#allocation36_spill] sm:$0xff]  ;;  %v4115_v22 = vld [vmem:[#allocation58_spill] sm:$0xff]  ;;  %v661_v27 = vmul.f32 %v4096_v45, %v4060_v58 }
 0x21d   :  { %v3108_v29 = vpop.permute.xlu1 %1086  ;;  %v1103_v35 = vpop.permute.xlu2 %1102  ;;  %v670_v25 = vadd.f32 %v646_v57, %v598_v31  ;;  %v920_v31 = vmul.f32 %v2945_v62, %v4088_v28 }
 0x21e   :  { %v1129_v9 = vsel %vm1122_vm11, %v3108_v29, %v1099_v7  ;;  %v1125_v2 = vsel %vm1122_vm11, %v1103_v35, %v3110_v15 }
 0x21f   :  { %v1157_v38 = vsel %vm282_vm13, %v1129_v9, 0.0  ;;  %v1166_v7 = vsel %vm283_vm12, %v1125_v2, 0.0  ;;  %v541_v9 = vmul.f32 %v4094_v11, %v4115_v22  ;;  %v992_v20 = vadd.f32 %v968_v0, %v920_v31 }
 0x220   :  { %v3123_v52 = vadd.f32 %v1157_v38, %v4114_v44  ;;  %1209 = vrot.lane.b32.xlu0 %v1062_v17, %s1815_s10  ;;  %1106 = vrot.lane.b32.xlu1 %v684_v56, %s1814_s7  ;;  %v3132_v16 = vadd.f32 %v1166_v7, %v2895_v26  ;;  %v4116_v17 = vld [vmem:[#allocation30_spill] sm:$0xff]  ;;  %v969_v7 = vmul.f32 %v2947_v33, %v4079_v43  ;;  %v4119_v33 = vld [vmem:[#allocation81_spill] sm:$0xff] }
 0x221   :  { %1076 = vrot.lane.b32.xlu2 %v670_v25, %s1814_s7  ;;  %v589_v56 = vmul.f32 %v4098_v42, %v4116_v17  ;;  %v1064_v51 = vadd.f32 %v1040_v55, %v992_v20  ;;  %v4117_v38 = vld [vmem:[#allocation86_spill] sm:$0xff]  ;;  %v4118_v25 = vld [vmem:[#allocation87_spill] sm:$0xff]  ;;  %v1041_v31 = vmul.f32 %v3039_v12, %v4038_v18  ;;  %v911_v43 = vmul.f32 %v2936_v30, %v4119_v33 }
 0x222   :  { %v3162_v44 = vld [vmem:[%s3758_s1] sm:$0xff]  ;;  %v3190_v18 = vld [vmem:[%s3758_s1 + $0x8] sm:$0xff]  ;;  %v925_v33 = vmul.f32 %v3016_v54, %v4115_v22  ;;  %v928_v22 = vmul.f32 %v2992_v24, %v4045_v63 }
 0x223   :  { %v613_v57 = vadd.f32 %v589_v56, %v541_v9  ;;  %v921_v9 = vmul.f32 %v2945_v62, %v4075_v10  ;;  %v4120_v62 = vld [vmem:[#allocation73_spill] sm:$0xff]  ;;  %v4121_v10 = vld [vmem:[#allocation6_spill] sm:$0xff] }
 0x224   :  { %v959_v12 = vmul.f32 %v2965_v6, %v4121_v10  ;;  %v1042_v6 = vmul.f32 %v3068_v37, %v4057_v48 }
 0x225   :  { %v1101_v39 = vpop.permute.xlu1 %1100  ;;  %v685_v53 = vadd.f32 %v661_v27, %v613_v57  ;;  %v993_v27 = vadd.f32 %v969_v7, %v921_v9  ;;  %v924_v7 = vmul.f32 %v3016_v54, %v4104_v59  ;;  %v3215_v9 = vld [vmem:[%s3758_s1 + $0x10] sm:$0xff] }
 0x226   :  { %v1124_v26 = vsel %vm1122_vm11, %v1101_v39, %v3071_v23  ;;  %v1130_v28 = vsel %vm1122_vm11, %v3041_v36, %v1101_v39 }
 0x227   :  { %v1161_v49 = vsel %vm282_vm13, %v1130_v28, 0.0  ;;  %v1162_v34 = vsel %vm283_vm12, %v1124_v26, 0.0  ;;  %v1065_v39 = vadd.f32 %v1041_v31, %v993_v27  ;;  %v4123_v28 = vld [vmem:[#allocation44_spill] sm:$0xff]  ;;  %v4127_v31 = vld [vmem:[#allocation75_spill] sm:$0xff]  ;;  %v972_v27 = vmul.f32 %v2961_v32, %v4111_v4 }
 0x228   :  { %v3154_v2 = vadd.f32 %v1161_v49, %v4117_v38  ;;  %v3157_v0 = vadd.f32 %v1162_v34, %v4118_v25  ;;  %1333 = vperm.xlu0 %1776, %v3162_v44   ;;  %1233 = vrot.lane.b32.xlu1 %v1064_v51, %s1815_s10  ;;  %v922_v51 = vmul.f32 %v3016_v54, %v4123_v28  ;;  %v4124_v49 = vld [vmem:[#allocation74_spill] sm:$0xff]  ;;  %v4125_v34 = vld [vmem:[#allocation79_spill] sm:$0xff] }
 0x229   :  { %1118 = vrot.lane.b32.xlu2 %v685_v53, %s1814_s7  ;;  %v4126_v53 = vld [vmem:[#allocation17_spill] sm:$0xff]  ;;  %v582_v4 = vmul.f32 %v4076_v47, %v4105_v61  ;;  %v926_v47 = vmul.f32 %v2992_v24, %v4043_v1  ;;  %v538_v1 = vmul.f32 %v4094_v11, %v4123_v28  ;;  %v658_v11 = vmul.f32 %v4096_v45, %v4057_v48  ;;  %v4135_v28 = vld [vmem:[#allocation32_spill] sm:$0xff]  ;;  %v4138_v48 = vld [vmem:[#allocation71_spill] sm:$0xff] }
 0x22a   :  { %v970_v38 = vmul.f32 %v2961_v32, %v4126_v53  ;;  %v927_v45 = vmul.f32 %v2992_v24, %v4138_v48 }
 0x22d   :  { %v3173_v55 = vpop.permute.xlu1 %1090 }
 0x22e   :  { %v1131_v56 = vsel %vm1122_vm11, %v3173_v55, %v1103_v35  ;;  %v4122_v35 = vld [vmem:[#allocation38_spill] sm:$0xff] }
 0x22f   :  { %v1165_v20 = vsel %vm282_vm13, %v1131_v56, 0.0  ;;  %v1031_v30 = vmul.f32 %v2984_v19, %v4122_v35  ;;  %v994_v19 = vadd.f32 %v970_v38, %v922_v51  ;;  %v1044_v56 = vmul.f32 %v3068_v37, %v4059_v14  ;;  %v3266_v38 = vld [vmem:[%s3758_s1 + $0x20] sm:$0xff] }
 0x230   :  { %v3183_v57 = vadd.f32 %v1165_v20, %v2898_v5  ;;  %1120 = vrot.lane.b32.xlu0 %v4120_v62, %s1814_s7  ;;  %1337 = vperm.xlu1 %1777, %v3190_v18   ;;  %v983_v5 = vadd.f32 %v959_v12, %v911_v43  ;;  %v996_v20 = vadd.f32 %v972_v27, %v924_v7  ;;  %v4132_v12 = vld [vmem:[#allocation21_spill] sm:$0xff] }
 0x231   :  { %1245 = vrot.lane.b32.xlu2 %v1065_v39, %s1815_s10  ;;  %v1066_v25 = vadd.f32 %v1042_v6, %v994_v19  ;;  %v534_v39 = vmul.f32 %v4074_v13, %v4109_v46  ;;  %v654_v14 = vmul.f32 %v4078_v41, %v4110_v21  ;;  %v973_v13 = vmul.f32 %v2961_v32, %v4116_v17  ;;  %v4129_v41 = vld [vmem:[#allocation65_spill] sm:$0xff]  ;;  %v4130_v21 = vld [vmem:[#allocation63_spill] sm:$0xff]  ;;  %v4134_v6 = vld [vmem:[#allocation56_spill] sm:$0xff] }
 0x232   :  { %v1055_v26 = vadd.f32 %v1031_v30, %v983_v5  ;;  %v1068_v59 = vadd.f32 %v1044_v56, %v996_v20  ;;  %v1045_v46 = vmul.f32 %v3068_v37, %v4060_v58  ;;  %v4128_v58 = vld [vmem:[#allocation31_spill] sm:$0xff]  ;;  %v974_v35 = vmul.f32 %v4129_v41, %v4132_v12  ;;  %v4133_v30 = vld [vmem:[#allocation49_spill] sm:$0xff] }
 0x233   :  { %v606_v43 = vadd.f32 %v582_v4, %v534_v39  ;;  %v976_v61 = vmul.f32 %v4129_v41, %v4128_v58  ;;  %v4131_v17 = vld [vmem:[#allocation43_spill] sm:$0xff]  ;;  %v929_v19 = vmul.f32 %v2992_v24, %v4134_v6  ;;  %v977_v7 = vmul.f32 %v4129_v41, %v4135_v28  ;;  %v4137_v4 = vld [vmem:[#allocation85_spill] sm:$0xff]  ;;  %v4144_v24 = vld [vmem:[#allocation18_spill] sm:$0xff] }
 0x234   :  { %v1048_v63 = vmul.f32 %v4131_v17, %v4130_v21  ;;  %v1046_v5 = vmul.f32 %v4131_v17, %v4133_v30  ;;  %v998_v51 = vadd.f32 %v974_v35, %v926_v47  ;;  %v971_v58 = vmul.f32 %v2961_v32, %v4144_v24  ;;  %v4146_v6 = vld [vmem:[#allocation9_spill] sm:$0xff] }
 0x235   :  { %v678_v62 = vadd.f32 %v654_v14, %v606_v43  ;;  %v4140_v14 = vld [vmem:[#allocation34_spill] sm:$0xff] }
 0x236   :  { %v4142_v43 = vld [vmem:[#allocation26_spill] sm:$0xff] }
 0x238   :  { %1096 = vrot.lane.b32.xlu1 %v4124_v49, %s1814_s7  ;;  %1217 = vrot.lane.b32.xlu0 %v1055_v26, %s1815_s10  ;;  %v1000_v26 = vadd.f32 %v976_v61, %v928_v22  ;;  %v4145_v61 = vld [vmem:[#allocation62_spill] sm:$0xff] }
 0x239   :  { %1078 = vrot.lane.b32.xlu2 %v4125_v34, %s1814_s7  ;;  %v1070_v34 = vadd.f32 %v1046_v5, %v998_v51  ;;  %v1043_v21 = vmul.f32 %v3068_v37, %v4145_v61 }
 0x23a   :  { %v1072_v49 = vadd.f32 %v1048_v63, %v1000_v26 }
 0x240   :  { %1211 = vrot.lane.b32.xlu1 %v1066_v25, %s1815_s10  ;;  %1341 = vperm.xlu0 %1776, %v3215_v9   ;;  %v586_v25 = vmul.f32 %v4098_v42, %v4126_v53  ;;  %v4139_v53 = vld [vmem:[#allocation76_spill] sm:$0xff] }
 0x241   :  { %1108 = vrot.lane.b32.xlu2 %v4127_v31, %s1814_s7  ;;  %v4136_v31 = vld [vmem:[#allocation64_spill] sm:$0xff] }
 0x242   :  { %v1049_v27 = vmul.f32 %v4131_v17, %v4136_v31  ;;  %v610_v20 = vadd.f32 %v586_v25, %v538_v1  ;;  %v4147_v25 = vld [vmem:[#allocation33_spill] sm:$0xff] }
 0x244   :  { %v682_v39 = vadd.f32 %v658_v11, %v610_v20 }
 0x248   :  { %1235 = vrot.lane.b32.xlu1 %v1068_v59, %s1815_s10  ;;  %1219 = vrot.lane.b32.xlu0 %v2974_v60, %s1815_s10  ;;  %v997_v60 = vadd.f32 %v973_v13, %v925_v33  ;;  %v1001_v59 = vadd.f32 %v977_v7, %v929_v19  ;;  %v923_v13 = vmul.f32 %v3016_v54, %v4140_v14 }
 0x249   :  { %1215 = vrot.lane.b32.xlu2 %v2941_v40, %s1815_s10  ;;  %v3247_v40 = vld [vmem:[%s3758_s1 + $0x18] sm:$0xff] }
 0x24a   :  { %v1069_v10 = vadd.f32 %v1045_v46, %v997_v60  ;;  %v1073_v33 = vadd.f32 %v1049_v27, %v1001_v59  ;;  %v4141_v46 = vld [vmem:[#allocation83_spill] sm:$0xff]  ;;  %v975_v60 = vmul.f32 %v4129_v41, %v4142_v43  ;;  %v995_v12 = vadd.f32 %v971_v58, %v923_v13 }
 0x24b   :  { %v264_v13 = vshra.s32 %v4101_v50, 4 }
 0x24c   :  { %v999_v63 = vadd.f32 %v975_v60, %v927_v45  ;;  %v1067_v30 = vadd.f32 %v1043_v21, %v995_v12 }
 0x24d   :  { %v3375_v12 = vand.u32 15, %v264_v13 }
 0x24f   :  { %vm280_vm1 = vcmp.ge.s32.totalorder %v3375_v12, 1  ;;  %vm284_vm3 = vcmp.le.s32.totalorder %v3375_v12, 14  ;;  %v3682_v12 = vld [vmem:[%s3760_s2 + $0x8] sm:$0x1] }
 0x250   :  { %1080 = vrot.lane.b32.xlu1 %v678_v62, %s1814_s7  ;;  %1345 = vperm.xlu0 %1776, %v3247_v40   ;;  %v4143_v62 = vld [vmem:[#allocation61_spill] sm:$0xff] }
 0x251   :  { %1247 = vrot.lane.b32.xlu2 %v1069_v10, %s1815_s10  ;;  %v1047_v10 = vmul.f32 %v4131_v17, %v4143_v62  ;;  %v4149_v62 = vld [vmem:[#allocation13_spill] sm:$0xff] }
 0x253   :  { %v1071_v35 = vadd.f32 %v1047_v10, %v999_v63 }
 0x258   :  { %1349 = vperm.xlu0 %1776, %v3266_v38   ;;  %1237 = vrot.lane.b32.xlu1 %v1072_v49, %s1815_s10 }
 0x259   :  { %1213 = vrot.lane.b32.xlu2 %v1070_v34, %s1815_s10  ;;  %v3298_v22 = vpop.permute.xlu1 %1203  ;;  %v3300_v47 = vpop.permute.xlu0 %1227 }
 0x25b   :  { %v3281_v56 = vpop.permute.xlu2 %1205 }
 0x260   :  { %1353 = vperm.xlu0 %1776, %v4137_v4   ;;  %1082 = vrot.lane.b32.xlu1 %v682_v39, %s1814_s7 }
 0x261   :  { %1249 = vrot.lane.b32.xlu2 %v1073_v33, %s1815_s10 }
 0x263   :  { %v1240_v42 = vpop.permute.xlu2 %1239 }
 0x264   :  { %v1252_v4 = vsel %vm1251_vm14, %v3300_v47, %v1240_v42  ;;  %v1270_v48 = vsel %vm1251_vm14, %v1240_v42, %v3298_v22 }
 0x265   :  { %v1287_v14 = vsel %vm287_vm0, %v1270_v48, 0.0 }
 0x266   :  { %v1311_v10 = vadd.f32 %v1287_v14, %v4149_v62  ;;  %v4151_v62 = vld [vmem:[#allocation46_spill] sm:$0xff] }
 0x268   :  { %1084 = vrot.lane.b32.xlu1 %v4139_v53, %s1814_s7  ;;  %v1286_v53 = vsel %vm286_vm15, %v1252_v4, 0.0 }
 0x269   :  { %1221 = vrot.lane.b32.xlu2 %v4141_v46, %s1815_s10  ;;  %v4148_v46 = vld [vmem:[#allocation3_spill] sm:$0xff]  ;;  %v1310_v60 = vadd.f32 %v1286_v53, %v3123_v52 }
 0x26a   :  { %v265_v43 = vshra.s32 %v4148_v46, 4 }
 0x26b   :  { %v1105_v54 = vpop.permute.xlu2 %1104 }
 0x26c   :  { %v3377_v52 = vand.u32 15, %v265_v43 }
 0x26e   :  { %vm281_vm2 = vcmp.ge.s32.totalorder %v3377_v52, 1  ;;  %vm285_vm4 = vcmp.le.s32.totalorder %v3377_v52, 14  ;;  %v3694_v52 = vld [vmem:[%s3760_s2 + $0x9] sm:$0x1] }
 0x270   :  { %1225 = vrot.lane.b32.xlu1 %v1071_v35, %s1815_s10 }
 0x271   :  { %1223 = vrot.lane.b32.xlu2 %v1067_v30, %s1815_s10 }
 0x272   :  { %v3308_v41 = vpop.permute.xlu1 %1229  ;;  %v1242_v17 = vpop.permute.xlu0 %1241 }
 0x273   :  { %v3310_v5 = vpop.permute.xlu2 %1231  ;;  %v1253_v42 = vsel %vm1251_vm14, %v3308_v41, %v1242_v17  ;;  %v1271_v61 = vsel %vm1251_vm14, %v1242_v17, %v3281_v56 }
 0x274   :  { %v1290_v35 = vsel %vm286_vm15, %v1253_v42, 0.0  ;;  %v4152_v42 = vld [vmem:[#allocation4_spill] sm:$0xff] }
 0x275   :  { %v1314_v4 = vadd.f32 %v1290_v35, %v3154_v2 }
 0x27a   :  { %v3312_v26 = vpop.permute.xlu1 %1092  ;;  %v3314_v32 = vpop.permute.xlu0 %1116 }
 0x27b   :  { %v1132_v37 = vsel %vm1122_vm11, %v3312_v26, %v1105_v54  ;;  %v1077_v51 = vpop.permute.xlu2 %1076  ;;  %v1126_v49 = vsel %vm1122_vm11, %v1105_v54, %v3314_v32 }
 0x27c   :  { %v1169_v34 = vsel %vm282_vm13, %v1132_v37, 0.0  ;;  %v1170_v1 = vsel %vm283_vm12, %v1126_v49, 0.0  ;;  %v1291_v49 = vsel %vm287_vm0, %v1271_v61, 0.0  ;;  %v1142_v13 = vsel %vm1122_vm11, %v3071_v23, %v1077_v51 }
 0x27d   :  { %v3327_v19 = vadd.f32 %v1169_v34, %v4146_v6  ;;  %v3330_v11 = vadd.f32 %v1170_v1, %v4147_v25  ;;  %v4150_v34 = vld [vmem:[#allocation11_spill] sm:$0xff]  ;;  %v1315_v48 = vadd.f32 %v1291_v49, %v3157_v0  ;;  %v1136_v0 = vsel %vm1122_vm11, %v1077_v51, %v3041_v36 }
 0x27e   :  { %v1159_v35 = vsel %vm280_vm1, %v1142_v13, 0.0 }
 0x282   :  { %v3332_v28 = vpop.permute.xlu1 %1207  ;;  %v3334_v7 = vpop.permute.xlu0 %1243 }
 0x283   :  { %v3336_v31 = vpop.permute.xlu2 %1118 }
 0x28a   :  { %v1075_v27 = vpop.permute.xlu1 %1074  ;;  %v3338_v20 = vpop.permute.xlu0 %1094 }
 0x28b   :  { %v3340_v59 = vpop.permute.xlu2 %1245  ;;  %v1135_v17 = vsel %vm1122_vm11, %v1075_v27, %v3108_v29  ;;  %v1141_v1 = vsel %vm1122_vm11, %v4150_v34, %v1075_v27 }
 0x28c   :  { %v1155_v53 = vsel %vm280_vm1, %v1141_v1, 0.0  ;;  %v1156_v29 = vsel %vm281_vm2, %v1135_v17, 0.0 }
 0x28d   :  { %v1180_v61 = vadd.f32 %v1156_v29, %v4152_v42 }
 0x292   :  { %v3343_v39 = vpop.permute.xlu1 %1106  ;;  %v3345_v33 = vpop.permute.xlu0 %1209 }
 0x293   :  { %v3355_v45 = vpop.permute.xlu2 %1078 }
 0x29a   :  { %v3368_v24 = vpop.permute.xlu1 %1233  ;;  %v1334_v58 = vpop.permute.xlu0 %1333 }
 0x29b   :  { %v3373_v21 = vpop.permute.xlu2 %1108  ;;  %v1358_v54 = vadd.f32 %v1334_v58, %v1310_v60  ;;  %v1359_v63 = vadd.f32 %v1334_v58, %v1311_v10  ;;  %v1179_v10 = vadd.f32 %v1155_v53, %v4151_v62  ;;  %v4154_v53 = vld [vmem:[#allocation89_spill] sm:$0xff] }
 0x29d   :  { %v1382_v30 = vmax.f32 %v1358_v54, 0.0  ;;  %v1383_v37 = vmax.f32 %v1359_v63, 0.0 }
 0x29f   :  { %v3389_v6 = vmin.f32 %v1382_v30, 6.0  ;;  %v3391_v25 = vmin.f32 %v1383_v37, 6.0 }
 0x2a1   :  { %v1568_v27 = vadd.f32 %v3391_v25, %v3389_v6 }
 0x2a2   :  { %v1338_v14 = vpop.permute.xlu1 %1337  ;;  %v3405_v2 = vpop.permute.xlu0 %1120 }
 0x2a3   :  { %v1216_v46 = vpop.permute.xlu2 %1215  ;;  %1569 = vadd.xlane.f32.xlu2 %v1568_v27  ;;  %v1362_v43 = vadd.f32 %v1338_v14, %v1314_v4  ;;  %v1363_v60 = vadd.f32 %v1338_v14, %v1315_v48  ;;  %v4153_v4 = vld [vmem:[#allocation88_spill] sm:$0xff] }
 0x2a4   :  { %v1258_v54 = vsel %vm1251_vm14, %v1216_v46, %v3300_v47  ;;  %v1264_v36 = vsel %vm1251_vm14, %v3298_v22, %v1216_v46  ;;  %v1160_v47 = vsel %vm281_vm2, %v1136_v0, 0.0  ;;  %v1183_v48 = vadd.f32 %v1159_v35, %v4153_v4 }
 0x2a5   :  { %v1284_v63 = vsel %vm284_vm3, %v1264_v36, 0.0  ;;  %v1285_v23 = vsel %vm285_vm4, %v1258_v54, 0.0  ;;  %v1386_v51 = vmax.f32 %v1362_v43, 0.0  ;;  %v1387_v49 = vmax.f32 %v1363_v60, 0.0 }
 0x2a6   :  { %v1308_v30 = vadd.f32 %v1284_v63, %v1179_v10  ;;  %v1309_v37 = vadd.f32 %v1285_v23, %v1180_v61  ;;  %v1184_v29 = vadd.f32 %v1160_v47, %v4154_v53  ;;  %v1254_v0 = vsel %vm1251_vm14, %v3310_v5, %v3334_v7 }
 0x2a7   :  { %v3429_v17 = vmin.f32 %v1386_v51, 6.0  ;;  %v3431_v1 = vmin.f32 %v1387_v49, 6.0 }
 0x2a8   :  { %v1356_v34 = vadd.f32 %v1334_v58, %v1308_v30  ;;  %v1357_v22 = vadd.f32 %v1334_v58, %v1309_v37  ;;  %v1272_v58 = vsel %vm1251_vm14, %v3334_v7, %v3332_v28 }
 0x2a9   :  { %v1571_v60 = vadd.f32 %v3431_v1, %v3429_v17  ;;  %v1295_v51 = vsel %vm287_vm0, %v1272_v58, 0.0 }
 0x2aa   :  { %v1380_v27 = vmax.f32 %v1356_v34, 0.0  ;;  %v1381_v46 = vmax.f32 %v1357_v22, 0.0  ;;  %v3435_v43 = vpop.permute.xlu1 %1096  ;;  %v1218_v13 = vpop.permute.xlu0 %1217  ;;  %v1319_v49 = vadd.f32 %v1295_v51, %v3132_v16  ;;  %v1137_v16 = vsel %vm1122_vm11, %v3355_v45, %v3173_v55 }
 0x2ab   :  { %v3447_v62 = vpop.permute.xlu2 %1247  ;;  %v1259_v10 = vsel %vm1251_vm14, %v1218_v13, %v3308_v41  ;;  %v1265_v42 = vsel %vm1251_vm14, %v3281_v56, %v1218_v13  ;;  %1572 = vadd.xlane.f32.xlu0 %v1571_v60  ;;  %v1294_v41 = vsel %vm286_vm15, %v1254_v0, 0.0  ;;  %v1133_v55 = vsel %vm1122_vm11, %v3338_v20, %v3343_v39 }
 0x2ac   :  { %v1288_v61 = vsel %vm284_vm3, %v1265_v42, 0.0  ;;  %v1289_v54 = vsel %vm285_vm4, %v1259_v10, 0.0  ;;  %v3459_v36 = vmin.f32 %v1380_v27, 6.0  ;;  %v3461_v23 = vmin.f32 %v1381_v46, 6.0 }
 0x2ad   :  { %v1312_v7 = vadd.f32 %v1288_v61, %v1183_v48  ;;  %v1313_v63 = vadd.f32 %v1289_v54, %v1184_v29  ;;  %v1318_v37 = vadd.f32 %v1294_v41, %v3183_v57  ;;  %v1273_v54 = vsel %vm1251_vm14, %v3340_v59, %v3345_v33  ;;  %v4156_v41 = vld [vmem:[#allocation90_spill] sm:$0xff] }
 0x2ae   :  { %v3469_v30 = vadd.f32 %v3461_v23, %v3459_v36 }
 0x2af   :  { %v1360_v56 = vadd.f32 %v1338_v14, %v1312_v7  ;;  %v1361_v35 = vadd.f32 %v1338_v14, %v1313_v63  ;;  %v1143_v14 = vsel %vm1122_vm11, %v3110_v15, %v3355_v45  ;;  %v1164_v15 = vsel %vm281_vm2, %v1137_v16, 0.0  ;;  %v4155_v45 = vld [vmem:[#allocation53_spill] sm:$0xff] }
 0x2b0   :  { %v1163_v0 = vsel %vm280_vm1, %v1143_v14, 0.0  ;;  %v1188_v51 = vadd.f32 %v1164_v15, %v4156_v41 }
 0x2b1   :  { %v1384_v47 = vmax.f32 %v1360_v56, 0.0  ;;  %v1385_v34 = vmax.f32 %v1361_v35, 0.0  ;;  %v1187_v61 = vadd.f32 %v1163_v0, %v4155_v45  ;;  %v1255_v56 = vsel %vm1251_vm14, %v3368_v24, %v3340_v59 }
 0x2b2   :  { %v3473_v22 = vpop.permute.xlu1 %1211  ;;  %v1342_v4 = vpop.permute.xlu0 %1341  ;;  %v1127_v59 = vsel %vm1122_vm11, %v3343_v39, %v3336_v31  ;;  %v1298_v14 = vsel %vm286_vm15, %v1255_v56, 0.0  ;;  %v4157_v39 = vld [vmem:[#allocation50_spill] sm:$0xff] }
 0x2b3   :  { %v3475_v48 = vpop.permute.xlu2 %1213  ;;  %v1366_v53 = vadd.f32 %v1342_v4, %v1318_v37  ;;  %v1367_v29 = vadd.f32 %v1342_v4, %v1319_v49  ;;  %v3477_v27 = vmin.f32 %v1384_v47, 6.0  ;;  %v3483_v46 = vmin.f32 %v1385_v34, 6.0 }
 0x2b5   :  { %v1390_v57 = vmax.f32 %v1366_v53, 0.0  ;;  %v1391_v13 = vmax.f32 %v1367_v29, 0.0  ;;  %v1435_v60 = vadd.f32 %v3483_v46, %v3477_v27 }
 0x2b7   :  { %v3493_v58 = vmin.f32 %v1390_v57, 6.0  ;;  %v3495_v10 = vmin.f32 %v1391_v13, 6.0  ;;  %1436 = vadd.xlane.f32.xlu0 %v1435_v60  ;;  %v1174_v60 = vsel %vm283_vm12, %v1127_v59, 0.0 }
 0x2b9   :  { %v1574_v42 = vadd.f32 %v3495_v10, %v3493_v58 }
 0x2ba   :  { %v3510_v7 = vpop.permute.xlu1 %1235  ;;  %v1220_v63 = vpop.permute.xlu0 %1219 }
 0x2bb   :  { %v1250_v35 = vpop.permute.xlu2 %1249  ;;  %v1260_v37 = vsel %vm1251_vm14, %v1220_v63, %v3310_v5  ;;  %v1266_v49 = vsel %vm1251_vm14, %v3332_v28, %v1220_v63  ;;  %1575 = vadd.xlane.f32.xlu1 %v1574_v42  ;;  %v1173_v5 = vsel %vm282_vm13, %v1133_v55, 0.0  ;;  %v1299_v28 = vsel %vm287_vm0, %v1273_v54, 0.0 }
 0x2bc   :  { %v1292_v47 = vsel %vm284_vm3, %v1266_v49, 0.0  ;;  %v1293_v34 = vsel %vm285_vm4, %v1260_v37, 0.0  ;;  %v1256_v16 = vsel %vm1251_vm14, %v3510_v7, %v3447_v62  ;;  %v1197_v0 = vadd.f32 %v1173_v5, %v4157_v39 }
 0x2bd   :  { %v1316_v53 = vadd.f32 %v1292_v47, %v1187_v61  ;;  %v1317_v29 = vadd.f32 %v1293_v34, %v1188_v51  ;;  %v1323_v15 = vadd.f32 %v1299_v28, %v3330_v11  ;;  %v1322_v42 = vadd.f32 %v1298_v14, %v3327_v19  ;;  %v4158_v47 = vld [vmem:[#allocation47_spill] sm:$0xff] }
 0x2be   :  { %v1274_v55 = vsel %vm1251_vm14, %v3447_v62, %v3473_v22  ;;  %v1302_v45 = vsel %vm286_vm15, %v1256_v16, 0.0 }
 0x2bf   :  { %v1364_v57 = vadd.f32 %v1342_v4, %v1316_v53  ;;  %v1365_v13 = vadd.f32 %v1342_v4, %v1317_v29 }
 0x2c1   :  { %v1388_v61 = vmax.f32 %v1364_v57, 0.0  ;;  %v1389_v54 = vmax.f32 %v1365_v13, 0.0 }
 0x2c2   :  { %v1081_v4 = vpop.permute.xlu1 %1080  ;;  %v1346_v63 = vpop.permute.xlu0 %1345 }
 0x2c3   :  { %v1138_v41 = vsel %vm1122_vm11, %v1081_v4, %v3312_v26  ;;  %v1144_v19 = vsel %vm1122_vm11, %v3314_v32, %v1081_v4  ;;  %v1222_v11 = vpop.permute.xlu2 %1221  ;;  %v1370_v51 = vadd.f32 %v1346_v63, %v1322_v42  ;;  %v1371_v56 = vadd.f32 %v1346_v63, %v1323_v15  ;;  %v4159_v32 = vld [vmem:[#allocation42_spill] sm:$0xff] }
 0x2c4   :  { %v1167_v62 = vsel %vm280_vm1, %v1144_v19, 0.0  ;;  %v1168_v37 = vsel %vm281_vm2, %v1138_v41, 0.0  ;;  %v1261_v49 = vsel %vm1251_vm14, %v1222_v11, %v3368_v24  ;;  %v1267_v26 = vsel %vm1251_vm14, %v3345_v33, %v1222_v11  ;;  %v4160_v24 = vld [vmem:[#allocation66_spill] sm:$0xff] }
 0x2c5   :  { %v1191_v34 = vadd.f32 %v1167_v62, %v4158_v47  ;;  %v1192_v53 = vadd.f32 %v1168_v37, %v4159_v32  ;;  %v1296_v29 = vsel %vm284_vm3, %v1267_v26, 0.0  ;;  %v1297_v59 = vsel %vm285_vm4, %v1261_v49, 0.0 }
 0x2c6   :  { %v1394_v5 = vmax.f32 %v1370_v51, 0.0  ;;  %v1395_v28 = vmax.f32 %v1371_v56, 0.0  ;;  %v3574_v14 = vmin.f32 %v1388_v61, 6.0  ;;  %v3576_v16 = vmin.f32 %v1389_v54, 6.0 }
 0x2c7   :  { %v1198_v57 = vadd.f32 %v1174_v60, %v4160_v24  ;;  %v1303_v33 = vsel %vm287_vm0, %v1274_v55, 0.0  ;;  %v1320_v13 = vadd.f32 %v1296_v29, %v1191_v34  ;;  %v1321_v39 = vadd.f32 %v1297_v59, %v1192_v53  ;;  %v4161_v59 = vld [vmem:[#allocation16_spill] sm:$0xff] }
 0x2c8   :  { %v1128_v15 = vsel %vm1122_vm11, %v3373_v21, %v3405_v2  ;;  %v3585_v42 = vmin.f32 %v1394_v5, 6.0  ;;  %v3587_v4 = vmin.f32 %v1395_v28, 6.0  ;;  %v3591_v61 = vadd.f32 %v3576_v16, %v3574_v14  ;;  %v4162_v28 = vld [vmem:[#allocation55_spill] sm:$0xff] }
 0x2c9   :  { %v1134_v60 = vsel %vm1122_vm11, %v3435_v43, %v3373_v21  ;;  %v1326_v55 = vadd.f32 %v1302_v45, %v1197_v0  ;;  %v1368_v54 = vadd.f32 %v1346_v63, %v1320_v13  ;;  %v1369_v41 = vadd.f32 %v1346_v63, %v1321_v39 }
 0x2ca   :  { %v1327_v19 = vadd.f32 %v1303_v33, %v1198_v57  ;;  %v1275_v11 = vsel %vm1251_vm14, %v1250_v35, %v3475_v48  ;;  %v3600_v51 = vpop.permute.xlu1 %1237  ;;  %v1350_v56 = vpop.permute.xlu0 %1349  ;;  %v1577_v62 = vadd.f32 %v3587_v4, %v3585_v42  ;;  %v1178_v45 = vsel %vm283_vm12, %v1128_v15, 0.0 }
 0x2cb   :  { %v1392_v37 = vmax.f32 %v1368_v54, 0.0  ;;  %v1393_v49 = vmax.f32 %v1369_v41, 0.0  ;;  %v1257_v21 = vsel %vm1251_vm14, %v3600_v51, %v1250_v35  ;;  %v1374_v0 = vadd.f32 %v1350_v56, %v1326_v55  ;;  %v1224_v57 = vpop.permute.xlu2 %1223 }
 0x2cc   :  { %v1177_v63 = vsel %vm282_vm13, %v1134_v60, 0.0  ;;  %v1375_v26 = vadd.f32 %v1350_v56, %v1327_v19  ;;  %1578 = vadd.xlane.f32.xlu2 %v1577_v62  ;;  %v1307_v47 = vsel %vm287_vm0, %v1275_v11, 0.0  ;;  %v1306_v32 = vsel %vm286_vm15, %v1257_v21, 0.0 }
 0x2cd   :  { %v1398_v34 = vmax.f32 %v1374_v0, 0.0  ;;  %v3615_v29 = vmin.f32 %v1392_v37, 6.0  ;;  %v3617_v35 = vmin.f32 %v1393_v49, 6.0  ;;  %v1202_v5 = vadd.f32 %v1178_v45, %v4161_v59  ;;  %v4164_v0 = vld [vmem:[#allocation91_spill] sm:$0xff] }
 0x2ce   :  { %v1399_v53 = vmax.f32 %v1375_v26, 0.0  ;;  %v1201_v24 = vadd.f32 %v1177_v63, %v4162_v28  ;;  %v1262_v3 = vsel %vm1251_vm14, %v1224_v57, %v3510_v7  ;;  %v1268_v60 = vsel %vm1251_vm14, %v3473_v22, %v1224_v57  ;;  %v4163_v22 = vld [vmem:[#allocation67_spill] sm:$0xff] }
 0x2cf   :  { %v1422_v33 = vmin.f32 %v1398_v34, 6.0  ;;  %v1441_v8 = vadd.f32 %v3617_v35, %v3615_v29  ;;  %v1331_v39 = vadd.f32 %v1307_v47, %v1202_v5  ;;  %v1301_v26 = vsel %vm285_vm4, %v1262_v3, 0.0 }
 0x2d0   :  { %v1423_v13 = vmin.f32 %v1399_v53, 6.0  ;;  %v1330_v15 = vadd.f32 %v1306_v32, %v1201_v24 }
 0x2d2   :  { %v1083_v55 = vpop.permute.xlu1 %1082  ;;  %v1354_v54 = vpop.permute.xlu0 %1353  ;;  %v1580_v41 = vadd.f32 %v1423_v13, %v1422_v33 }
 0x2d3   :  { %v1139_v19 = vsel %vm1122_vm11, %v1083_v55, %v3338_v20  ;;  %v1145_v11 = vsel %vm1122_vm11, %v3336_v31, %v1083_v55  ;;  %v1378_v62 = vadd.f32 %v1354_v54, %v1330_v15  ;;  %v1379_v37 = vadd.f32 %v1354_v54, %v1331_v39 }
 0x2d4   :  { %v1171_v7 = vsel %vm280_vm1, %v1145_v11, 0.0  ;;  %v1172_v49 = vsel %vm281_vm2, %v1139_v19, 0.0  ;;  %1433 = vadd.xlane.f32.xlu2 %v3469_v30  ;;  %1581 = vadd.xlane.f32.xlu1 %v1580_v41  ;;  %v1300_v31 = vsel %vm284_vm3, %v1268_v60, 0.0 }
 0x2d5   :  { %v1195_v21 = vadd.f32 %v1171_v7, %v4163_v22  ;;  %v1196_v45 = vadd.f32 %v1172_v49, %v4164_v0  ;;  %v1402_v20 = vmax.f32 %v1378_v62, 0.0  ;;  %v1403_v63 = vmax.f32 %v1379_v37, 0.0 }
 0x2d7   :  { %v1324_v47 = vadd.f32 %v1300_v31, %v1195_v21  ;;  %v1325_v34 = vadd.f32 %v1301_v26, %v1196_v45  ;;  %v1426_v32 = vmin.f32 %v1402_v20, 6.0  ;;  %v1427_v53 = vmin.f32 %v1403_v63, 6.0 }
 0x2d8   :  { %v1819_v21 = vmov 18  }
 0x2d9   :  { %1655 = vmatpush.msrb.mxu2 %v1426_v32  ;;  %v1583_v59 = vadd.f32 %v1427_v53, %v1426_v32  ;;  %1675 = vmatpush.msrb.mxu3 %v1427_v53  ;;  %v1372_v30 = vadd.f32 %v1350_v56, %v1324_v47  ;;  %v1373_v5 = vadd.f32 %v1350_v56, %v1325_v34  ;;  %v1820_v32 = vmov 17  }
 0x2da   :  { %v1085_v28 = vpop.permute.xlu1 %1084  ;;  %1779 = vset.pattern.permute.xlu1 %v1819_v21  ;;  %1778 = vset.pattern.permute.xlu0 %v1820_v32 }
 0x2db   :  { %1656 = vmatpush.msrb.mxu2 %v1422_v33  ;;  %1676 = vmatpush.msrb.mxu3 %v1423_v13  ;;  %v1396_v24 = vmax.f32 %v1372_v30, 0.0  ;;  %v1397_v57 = vmax.f32 %v1373_v5, 0.0  ;;  %v1140_v39 = vsel %vm1122_vm11, %v1085_v28, %v3435_v43  ;;  %v1146_v15 = vsel %vm1122_vm11, %v3405_v2, %v1085_v28 }
 0x2dc   :  { %1439 = vadd.xlane.f32.xlu2 %v3591_v61  ;;  %1442 = vadd.xlane.f32.xlu1 %v1441_v8  ;;  %v1175_v61 = vsel %vm280_vm1, %v1146_v15, 0.0  ;;  %v1176_v43 = vsel %vm281_vm2, %v1140_v39, 0.0  ;;  %v4166_v8 = vld [vmem:[#allocation72_spill] sm:$0xff] }
 0x2dd   :  { %1584 = vadd.xlane.f32.xlu0 %v1583_v59  ;;  %1657 = vmatpush.msrb.mxu2 %v3585_v42  ;;  %v1420_v56 = vmin.f32 %v1396_v24, 6.0  ;;  %v1421_v3 = vmin.f32 %v1397_v57, 6.0  ;;  %v4165_v42 = vld [vmem:[#allocation60_spill] sm:$0xff]  ;;  %v1797_v24 = vld [vmem:[%s3758_s1 + $0x28] sm:$0xff] }
 0x2de   :  { %1677 = vmatpush.msrb.mxu3 %v3587_v4  ;;  %v1199_v13 = vadd.f32 %v1175_v61, %v4165_v42  ;;  %v1200_v4 = vadd.f32 %v1176_v43, %v4166_v8  ;;  %1780 = vset.pattern.permute.xlu2 %v1820_v32 }
 0x2df   :  { %1658 = vmatpush.msrb.mxu2 %v3493_v58  ;;  %v1444_v33 = vadd.f32 %v1421_v3, %v1420_v56 }
 0x2e0   :  { %1678 = vmatpush.msrb.mxu3 %v3495_v10 }
 0x2e1   :  { %1659 = vmatpush.msrb.mxu2 %v3429_v17 }
 0x2e2   :  { %1679 = vmatpush.msrb.mxu3 %v3431_v1  ;;  %v1226_v2 = vpop.permute.xlu1 %1225 }
 0x2e3   :  { %v1263_v58 = vsel %vm1251_vm14, %v1226_v2, %v3600_v51  ;;  %v1269_v60 = vsel %vm1251_vm14, %v3475_v48, %v1226_v2  ;;  %1660 = vmatpush.msrb.mxu2 %v3389_v6 }
 0x2e4   :  { %v1304_v17 = vsel %vm284_vm3, %v1269_v60, 0.0  ;;  %v1305_v1 = vsel %vm285_vm4, %v1263_v58, 0.0  ;;  %1445 = vadd.xlane.f32.xlu2 %v1444_v33  ;;  %1680 = vmatpush.msrb.mxu3 %v3391_v25 }
 0x2e5   :  { %v1328_v10 = vadd.f32 %v1304_v17, %v1199_v13  ;;  %v1329_v55 = vadd.f32 %v1305_v1, %v1200_v4 }
 0x2e7   :  { %v1376_v41 = vadd.f32 %v1354_v54, %v1328_v10  ;;  %v1377_v19 = vadd.f32 %v1354_v54, %v1329_v55 }
 0x2e9   :  { %v1400_v51 = vmax.f32 %v1376_v41, 0.0  ;;  %v1401_v11 = vmax.f32 %v1377_v19, 0.0 }
 0x2eb   :  { %v1424_v62 = vmin.f32 %v1400_v51, 6.0  ;;  %v1425_v50 = vmin.f32 %v1401_v11, 6.0 }
 0x2ed   :  { %1534 = vmatpush.msrb.mxu0 %v1424_v62  ;;  %v1447_v48 = vadd.f32 %v1425_v50, %v1424_v62  ;;  %1554 = vmatpush.msrb.mxu1 %v1425_v50 }
 0x2ef   :  { %1535 = vmatpush.msrb.mxu0 %v1420_v56  ;;  %1555 = vmatpush.msrb.mxu1 %v1421_v3 }
 0x2f0   :  { %1448 = vadd.xlane.f32.xlu0 %v1447_v48 }
 0x2f1   :  { %1536 = vmatpush.msrb.mxu0 %v3615_v29  ;;  %1556 = vmatpush.msrb.mxu1 %v3617_v35 }
 0x2f3   :  { %1537 = vmatpush.msrb.mxu0 %v3574_v14  ;;  %1557 = vmatpush.msrb.mxu1 %v3576_v16 }
 0x2f5   :  { %1481 = vrot.lane.b32.xlu1 %v3682_v12, %s1817_s23  ;;  %1538 = vmatpush.msrb.mxu0 %v3477_v27 }
 0x2f6   :  { %1558 = vmatpush.msrb.mxu1 %v3483_v46 }
 0x2f7   :  { %1539 = vmatpush.msrb.mxu0 %v3459_v36 }
 0x2f8   :  { %1559 = vmatpush.msrb.mxu1 %v3461_v23 }
 0x2fc   :  { %1495 = vrot.lane.b32.xlu2 %v3694_v52, %s1818_s26 }
 0x316   :  { %v1570_v6 = vpop.xlane.xlu2 %1569 }
 0x317   :  { %v1586_v27 = vmul.f32 0.00390625, %v1570_v6 }
 0x319   :  { %v1592_v7 = vmul.f32 %v3162_v44, %v1586_v27 }
 0x31b   :  { %v1598_v20 = vsel %vm1462_vm5, %v1592_v7, 0.0 }
 0x31e   :  { %v1573_v16 = vpop.xlane.xlu0 %1572 }
 0x31f   :  { %v1587_v29 = vmul.f32 0.00390625, %v1573_v16 }
 0x321   :  { %v1593_v46 = vmul.f32 %v3190_v18, %v1587_v29 }
 0x323   :  { %v1599_v0 = vsel %vm1462_vm5, %v1593_v46, 0.0 }
 0x324   :  { %v1600_v26 = vadd.f32 %v1599_v0, %v1598_v20 }
 0x32a   :  { %v1437_v37 = vpop.xlane.xlu0 %1436 }
 0x32b   :  { %v1451_v3 = vmul.f32 0.00390625, %v1437_v37 }
 0x32d   :  { %v1457_v8 = vmul.f32 %v3190_v18, %v1451_v3 }
 0x32e   :  { %v1576_v25 = vpop.xlane.xlu1 %1575 }
 0x32f   :  { %v1588_v35 = vmul.f32 0.00390625, %v1576_v25  ;;  %v1464_v55 = vsel %vm1462_vm5, %v1457_v8, 0.0 }
 0x331   :  { %v1594_v49 = vmul.f32 %v3215_v9, %v1588_v35 }
 0x333   :  { %v1601_v63 = vsel %vm1462_vm5, %v1594_v49, 0.0 }
 0x334   :  { %v1602_v53 = vadd.f32 %v1601_v63, %v1600_v26 }
 0x33f   :  { %v1579_v14 = vpop.xlane.xlu2 %1578 }
 0x340   :  { %v1589_v36 = vmul.f32 0.00390625, %v1579_v14 }
 0x342   :  { %v1595_v45 = vmul.f32 %v3247_v40, %v1589_v36 }
 0x344   :  { %v1603_v47 = vsel %vm1462_vm5, %v1595_v45, 0.0 }
 0x345   :  { %v1604_v28 = vadd.f32 %v1603_v47, %v1602_v53 }
 0x347   :  { %v1434_v54 = vpop.xlane.xlu2 %1433  ;;  %v1582_v23 = vpop.xlane.xlu1 %1581 }
 0x348   :  { %v1590_v22 = vmul.f32 0.00390625, %v1582_v23  ;;  %v1450_v39 = vmul.f32 0.00390625, %v1434_v54 }
 0x34a   :  { %v1596_v31 = vmul.f32 %v3266_v38, %v1590_v22  ;;  %v1456_v43 = vmul.f32 %v3162_v44, %v1450_v39 }
 0x34c   :  { %v1605_v30 = vsel %vm1462_vm5, %v1596_v31, 0.0  ;;  %v1463_v60 = vsel %vm1462_vm5, %v1456_v43, 0.0 }
 0x34d   :  { %v1606_v15 = vadd.f32 %v1605_v30, %v1604_v28  ;;  %v1465_v51 = vadd.f32 %v1464_v55, %v1463_v60  ;;  %v1429_v28 = vld [vmem:[%s3760_s2 + $0xa] sm:$0x1] }
 0x34f   :  { %v1440_v34 = vpop.xlane.xlu2 %1439  ;;  %v1443_v42 = vpop.xlane.xlu1 %1442 }
 0x350   :  { %v1585_v59 = vpop.xlane.xlu0 %1584  ;;  %v1452_v33 = vmul.f32 0.00390625, %v1440_v34  ;;  %v1453_v17 = vmul.f32 0.00390625, %v1443_v42 }
 0x351   :  { %v1591_v5 = vmul.f32 0.00390625, %v1585_v59 }
 0x352   :  { %v1458_v4 = vmul.f32 %v3215_v9, %v1452_v33  ;;  %v1459_v44 = vmul.f32 %v3247_v40, %v1453_v17  ;;  %v1428_v33 = vld [vmem:[%s3760_s2] sm:$0xff] }
 0x353   :  { %v1597_v57 = vmul.f32 %v1797_v24, %v1591_v5 }
 0x354   :  { %v1466_v41 = vsel %vm1462_vm5, %v1458_v4, 0.0  ;;  %v1468_v6 = vsel %vm1462_vm5, %v1459_v44, 0.0 }
 0x355   :  { %v1607_v56 = vsel %vm1462_vm5, %v1597_v57, 0.0  ;;  %v1467_v18 = vadd.f32 %v1466_v41, %v1465_v51 }
 0x356   :  { %v1608_v61 = vadd.f32 %v1607_v56, %v1606_v15 }
 0x357   :  { %v1446_v13 = vpop.xlane.xlu2 %1445  ;;  %v1469_v29 = vadd.f32 %v1468_v6, %v1467_v18 }
 0x358   :  { %v1609_v2 = vrot.slane %v1608_v61, 4  ;;  %v1454_v1 = vmul.f32 0.00390625, %v1446_v13 }
 0x35a   :  { %v1610_v58 = vadd.f32 %v1609_v2, %v1608_v61  ;;  %v1460_v11 = vmul.f32 %v3266_v38, %v1454_v1  ;;  %v1821_v61 = vmov 48  }
 0x35c   :  { %v1611_v10 = vrot.slane %v1610_v58, 2  ;;  %v1470_v25 = vsel %vm1462_vm5, %v1460_v11, 0.0 }
 0x35d   :  { %v1471_v46 = vadd.f32 %v1470_v25, %v1469_v29 }
 0x35e   :  { %v1612_v19 = vadd.f32 %v1611_v10, %v1610_v58 }
 0x35f   :  { %v1496_v50 = vpop.permute.xlu2 %1495 }
 0x360   :  { %v1613_v62 = vrot.slane %v1612_v19, 1 }
 0x362   :  { %v1614_v9 = vadd.f32 %v1613_v62, %v1612_v19 }
 0x363   :  { %v1449_v48 = vpop.xlane.xlu0 %1448 }
 0x364   :  { %v1625_v14 = vadd.f32 %v1614_v9, %v1496_v50  ;;  %v1455_v16 = vmul.f32 0.00390625, %v1449_v48  ;;  %v1799_v48 = vld [vmem:[%s3759_s0 + $0x18] sm:$0xff] }
 0x366   :  { %v1626_v27 = vmax.f32 %v1625_v14, 0.0  ;;  %v1461_v35 = vmul.f32 %v1797_v24, %v1455_v16 }
 0x367   :  { %v1482_v36 = vpop.permute.xlu1 %1481 }
 0x368   :  { %v1627_v54 = vmin.f32 %v1626_v27, 6.0  ;;  %v1472_v40 = vsel %vm1462_vm5, %v1461_v35, 0.0  ;;  %v1615_v38 = vadd.f32 %v1614_v9, %v1482_v36  ;;  %v1800_v27 = vld [vmem:[%s3759_s0] sm:$0xff] }
 0x369   :  { %v1473_v23 = vadd.f32 %v1472_v40, %v1471_v46  ;;  %v1801_v46 = vld [vmem:[%s3759_s0 + $0x8] sm:$0xff] }
 0x36a   :  { %v1616_v37 = vmax.f32 %v1615_v38, 0.0  ;;  %1630 = vperm.xlu1 %1779, %v1627_v54  }
 0x36b   :  { %v1474_v7 = vrot.slane %v1473_v23, 4 }
 0x36c   :  { %v1617_v49 = vmin.f32 %v1616_v37, 6.0 }
 0x36d   :  { %v1475_v22 = vadd.f32 %v1474_v7, %v1473_v23 }
 0x36e   :  { %1620 = vperm.xlu0 %1778, %v1617_v49  }
 0x36f   :  { %v1476_v0 = vrot.slane %v1475_v22, 2 }
 0x371   :  { %v1477_v45 = vadd.f32 %v1476_v0, %v1475_v22 }
 0x373   :  { %v1478_v20 = vrot.slane %v1477_v45, 1 }
 0x375   :  { %v1479_v63 = vadd.f32 %v1478_v20, %v1477_v45 }
 0x376   :  { %1782 = vset.pattern.permute.xlu0 %v1819_v21 }
 0x377   :  { %v1484_v31 = vadd.f32 %v1482_v36, %v1479_v63  ;;  %v1498_v26 = vadd.f32 %v1496_v50, %v1479_v63  ;;  %v1798_v50 = vld [vmem:[%s3759_s0 + $0x10] sm:$0xff] }
 0x379   :  { %v1485_v47 = vmax.f32 %v1484_v31, 0.0  ;;  %v1499_v34 = vmax.f32 %v1498_v26, 0.0 }
 0x37b   :  { %v1486_v32 = vmin.f32 %v1485_v47, 6.0  ;;  %v1500_v53 = vmin.f32 %v1499_v34, 6.0 }
 0x37d   :  { %1503 = vperm.xlu1 %1779, %v1500_v53   ;;  %1489 = vperm.xlu2 %1780, %v1486_v32  }
 0x385   :  { %1781 = vset.pattern.permute.xlu2 %v1821_v61 }
 0x386   :  { %1517 = vperm.xlu2 %1781, %v1428_v33  }
 0x3d7   :  { %v1490_v15 = vpop.permute.xlu2 %1489 }
 0x3d8   :  { %v1492_v3 = vmul.f32 %v1490_v15, %v3682_v12 }
 0x3da   :  { %v1493_v2 = vadd.f32 %v1492_v3, %v1429_v28 }
 0x3dc   :  { %v1631_v59 = vpop.permute.xlu1 %1630 }
 0x3dd   :  { %v1633_v24 = vmul.f32 %v1631_v59, %v3694_v52 }
 0x3e0   :  { %v1621_v30 = vpop.permute.xlu0 %1620 }
 0x3e1   :  { %v1623_v5 = vmul.f32 %v1621_v30, %v3682_v12 }
 0x3e3   :  { %v1624_v57 = vadd.f32 %v1623_v5, %v1429_v28 }
 0x3e5   :  { %v1634_v21 = vadd.f32 %v1633_v24, %v1624_v57 }
 0x3e7   :  { %v1635_v39 = vsub.f32 0.0, %v1634_v21 }
 0x3e9   :  { %v1636_v56 = vmul.f32 1.442695, %v1635_v39 }
 0x3eb   :  { %1783 = vpow2.f32 %v1636_v56 }
 0x3ef   :  { %v1504_v43 = vpop.permute.xlu1 %1503 }
 0x3f0   :  { %v1506_v42 = vmul.f32 %v1504_v43, %v3694_v52  ;;  %v1518_v52 = vpop.permute.xlu2 %1517 }
 0x3f1   :  { %v1784_v13 = vpop.eup %1783 }
 0x3f2   :  { %v1638_v8 = vadd.f32 1.0, %v1784_v13  ;;  %v1507_v4 = vadd.f32 %v1506_v42, %v1493_v2 }
 0x3f4   :  { %1785 = vrcp.f32 %v1638_v8  ;;  %v1508_v58 = vsub.f32 0.0, %v1507_v4 }
 0x3f6   :  { %v1509_v60 = vmul.f32 1.442695, %v1508_v58 }
 0x3f8   :  { %1787 = vpow2.f32 %v1509_v60 }
 0x3fa   :  { %v1786_v17 = vpop.eup %1785 }
 0x3fb   :  { %v1640_v12 = vperm.slane %v1786_v17, 0 }
 0x3fd   :  { %v1641_v1 = vmul.f32 %v1640_v12, %v1428_v33 }
 0x3fe   :  { %v1788_v10 = vpop.eup %1787 }
 0x3ff   :  { %v1511_v55 = vadd.f32 1.0, %v1788_v10  ;;  %1719 = vmatmul.msk.f32.vlgmr.msrb.gmra.mxu2 %vm1520_vm6, %v1641_v1  ;;  %1720 = vmatmul.msk.f32.vlgmr.msrb.gmra.mxu3 %vm1520_vm6, %v1641_v1 }
 0x401   :  { %1789 = vrcp.f32 %v1511_v55 }
 0x407   :  { %v1790_v41 = vpop.eup %1789 }
 0x408   :  { %v1513_v19 = vperm.slane %v1790_v41, 0 }
 0x40a   :  { %v1514_v51 = vmul.f32 %v1513_v19, %v1428_v33 }
 0x40c   :  { %1717 = vmatmul.msk.f32.vlgmr.msrb.gmra.mxu0 %vm1520_vm6, %v1514_v51  ;;  %1718 = vmatmul.msk.f32.vlgmr.msrb.gmra.mxu1 %vm1520_vm6, %v1514_v51 }
 0x482   :  { %v1662_v44 = vpop.f32.mrf.mxu2  ;;  %v1682_v11 = vpop.f32.mrf.mxu3 }
 0x483   :  { %v1663_v62 = vadd.f32 %v1662_v44, %v1518_v52  ;;  %v1683_v18 = vadd.f32 %v1682_v11, %v1518_v52 }
 0x485   :  { %v1685_v9 = vadd.f32 %v1798_v50, %v1663_v62  ;;  %v1686_v6 = vadd.f32 %v1799_v48, %v1683_v18 }
 0x487   :  { %1687 = vst [vmem:[%s3761_s3 + $0x10] sm:$0xff] %v1685_v9 }
 0x488   :  { %1688 = vst [vmem:[%s3761_s3 + $0x18] sm:$0xff] %v1686_v6 }
 0x489   :  { %v1541_v25 = vpop.f32.mrf.mxu0  ;;  %v1561_v14 = vpop.f32.mrf.mxu1 }
 0x48a   :  { %v1542_v16 = vadd.f32 %v1541_v25, %v1518_v52  ;;  %v1562_v29 = vadd.f32 %v1561_v14, %v1518_v52 }
 0x48c   :  { %v1564_v35 = vadd.f32 %v1800_v27, %v1542_v16  ;;  %v1565_v36 = vadd.f32 %v1801_v46, %v1562_v29 }
 0x48e   :  { %1566 = vst [vmem:[%s3761_s3] sm:$0xff] %v1564_v35 }
 0x48f   :  { %1567 = vst [vmem:[%s3761_s3 + $0x8] sm:$0xff] %v1565_v36 }

</bundles_post_ra>
